<compile_context>
chip_gen: v7x
topology: tpu7x:2x2x1
jax: 0.10.0
libtpu: 0.0.40
codegen_flags: <defaults>
</compile_context>

<pallas_src>
import functools

import jax
import jax.numpy as jnp
from jax.experimental import pallas as pl
from jax.experimental.pallas import tpu as pltpu


def _round_up(n, m):
    return (n + m - 1) // m * m


def _pad_dim(n):
    # Lane-dense padding: 128 for small dims (optimal for v5e's 128x128 MXU and
    # keeps the demo tiny), multiples of 256 once large (v6e/v7x 256x256 MXUs).
    return _round_up(n, 256) if n > 128 else 128


# ----------------------------------------------------------------------------
# Fused kernel: tap-packed conv matmul + ReLU + incremental pool + CBM head
# ----------------------------------------------------------------------------
def _cbm_fused_kernel(x_ref, cw_ref, cb_ref, wc_ref, mean_ref, istd_ref,
                      wg_ref, bg_ref, logits_ref, proj_ref, feat_ref,
                      *, HW, BT, Cp):
    i = pl.program_id(1)

    # conv(3x3, SAME) as ONE tap-packed matmul (bf16 operands, f32 accumulate),
    # then bias + ReLU.  Intermediate is only (BT*HW, Cp) for this slab.
    acts = jnp.dot(x_ref[...], cw_ref[...], preferred_element_type=jnp.float32)
    acts = jnp.maximum(acts + cb_ref[...], 0.0)                    # (BT*HW, Cp)

    # Global average pool of this batch slab -> persistent feat scratch rows.
    pooled = jnp.mean(acts.reshape(BT, HW, Cp), axis=1)            # (BT, Cp) f32
    row0 = pl.multiple_of(i * BT, BT)
    feat_ref[pl.ds(row0, BT), :] = pooled

    # CBM head: run ONCE per core-slice on all accumulated batch rows (large M
    # per MXU weight load instead of re-staging W_c^T / W_g^T every tile).
    @pl.when(i == pl.num_programs(1) - 1)
    def _():
        feat = feat_ref[...].astype(jnp.bfloat16)
        c = jnp.dot(feat, wc_ref[...], preferred_element_type=jnp.float32)
        proj = (c - mean_ref[...]) * istd_ref[...]                 # (c - mean) * (1/std)
        proj_ref[...] = proj
        logits_ref[...] = (jnp.dot(proj.astype(jnp.bfloat16), wg_ref[...],
                                   preferred_element_type=jnp.float32)
                           + bg_ref[...])


# ----------------------------------------------------------------------------
# Wrapper: layout plumbing + single pallas_call
# ----------------------------------------------------------------------------
def cbm_forward(x, params, *, n_split=2, vmem_budget_bytes=48 * 1024 * 1024):
    conv_w, conv_b = params["conv_w"], params["conv_b"]
    W_c, W_g, b_g = params["W_c"], params["W_g"], params["b_g"]
    proj_mean, proj_std = params["proj_mean"], params["proj_std"]

    B, C_in, H, W = x.shape
    C_feat = conv_w.shape[0]
    Nc, Ncls = W_c.shape[0], W_g.shape[0]
    HW = H * W
    Kdim = 9 * C_in

    # TODO(synk): for spatial sizes where HW % 8 != 0 (e.g. 7x7 backbones) the
    # in-kernel (BT*HW, Cp)->(BT, HW, Cp) reshape should be replaced by a
    # matmul-based pool; demo uses HW=256.
    assert HW % 8 == 0

    Cp = _pad_dim(C_feat)
    Ncp = _pad_dim(Nc)
    Nclsp = _pad_dim(Ncls)

    # --- batch tiling derived from a VMEM byte budget (fixed fallback) ---
    # per batch element per step: bf16 x tile (double-buffered) + f32 acts (+ slack)
    conv_bytes_per_elem = HW * (2 * 2 * Kdim + (4 + 2) * Cp)
    bt_budget = max(8, (vmem_budget_bytes // 2) // conv_bytes_per_elem // 8 * 8)
    need = -(-B // n_split)                       # batch elements per core-slice
    BT = min(bt_budget, _round_up(need, 8))       # batch elements per inner grid step
    B_core = _round_up(need, BT)                  # batch rows handled per core-slice
    B_pad = n_split * B_core                      # padded total batch
    G_inner = B_core // BT
    rows = BT * HW

    # --- layout plumbing: tap-packed im2col (SAME padding), bf16 cast ONCE ---
    x_nhwc = x.astype(jnp.bfloat16).transpose(0, 2, 3, 1)          # (B, H, W, C_in)
    xp = jnp.pad(x_nhwc, ((0, 0), (1, 1), (1, 1), (0, 0)))
    taps = [xp[:, dy:dy + H, dx:dx + W, :] for dy in range(3) for dx in range(3)]
    x_patch = jnp.concatenate(taps, axis=-1).reshape(B * HW, Kdim)  # (B*HW, 9*C_in)
    x_patch = jnp.pad(x_patch, ((0, (B_pad - B) * HW), (0, 0)))

    cw = conv_w.transpose(2, 3, 1, 0).reshape(Kdim, C_feat)        # (ky,kx,ci) x co
    cw = jnp.pad(cw, ((0, 0), (0, Cp - C_feat))).astype(jnp.bfloat16)
    cb = jnp.pad(conv_b.reshape(1, C_feat).astype(jnp.float32),
                 ((0, 0), (0, Cp - C_feat)))

    wc_t = jnp.pad(W_c.T, ((0, Cp - C_feat), (0, Ncp - Nc))).astype(jnp.bfloat16)
    mean = jnp.pad(proj_mean.reshape(1, Nc).astype(jnp.float32),
                   ((0, 0), (0, Ncp - Nc)))
    istd = jnp.pad((1.0 / proj_std).reshape(1, Nc).astype(jnp.float32),
                   ((0, 0), (0, Ncp - Nc)))
    wg_t = jnp.pad(W_g.T, ((0, Ncp - Nc), (0, Nclsp - Ncls))).astype(jnp.bfloat16)
    bg = jnp.pad(b_g.reshape(1, Ncls).astype(jnp.float32),
                 ((0, 0), (0, Nclsp - Ncls)))

    kernel = functools.partial(_cbm_fused_kernel, HW=HW, BT=BT, Cp=Cp)

    logits_p, proj_p = pl.pallas_call(
        kernel,
        out_shape=(jax.ShapeDtypeStruct((B_pad, Nclsp), jnp.float32),
                   jax.ShapeDtypeStruct((B_pad, Ncp), jnp.float32)),
        grid=(n_split, G_inner),
        in_specs=[
            pl.BlockSpec((rows, Kdim), lambda o, i: (o * G_inner + i, 0)),  # x patches
            # Resident weights / constants (constant block index -> fetched once).
            # TODO(synk): add pipeline_mode=pl.Buffered(1) at real CBM sizes so
            # W_c^T / W_g^T are not double-buffered (v7x 64 MiB VMEM).
            pl.BlockSpec((Kdim, Cp), lambda o, i: (0, 0)),       # conv weights
            pl.BlockSpec((1, Cp), lambda o, i: (0, 0)),          # conv bias
            pl.BlockSpec((Cp, Ncp), lambda o, i: (0, 0)),        # W_c^T
            pl.BlockSpec((1, Ncp), lambda o, i: (0, 0)),         # proj_mean
            pl.BlockSpec((1, Ncp), lambda o, i: (0, 0)),         # 1 / proj_std
            pl.BlockSpec((Ncp, Nclsp), lambda o, i: (0, 0)),     # W_g^T
            pl.BlockSpec((1, Nclsp), lambda o, i: (0, 0)),       # b_g
        ],
        out_specs=(pl.BlockSpec((B_core, Nclsp), lambda o, i: (o, 0)),
                   pl.BlockSpec((B_core, Ncp), lambda o, i: (o, 0))),
        scratch_shapes=[pltpu.VMEM((B_core, Cp), jnp.float32)],   # persistent feat
        compiler_params=pltpu.CompilerParams(
            dimension_semantics=("parallel", "arbitrary"),
            vmem_limit_bytes=vmem_budget_bytes),
    )(x_patch, cw, cb, wc_t, mean, istd, wg_t, bg)

    return logits_p[:B, :Ncls], proj_p[:B, :Nc]


# ----------------------------------------------------------------------------
# Pure-JAX reference (matmul_dtype=bf16 mimics the kernel's operand casts)
# ----------------------------------------------------------------------------
def cbm_reference(x, params, *, matmul_dtype=jnp.float32):
    md = matmul_dtype
    conv_w, conv_b = params["conv_w"], params["conv_b"]
    acts = jax.lax.conv_general_dilated(
        x.astype(md), conv_w.astype(md), window_strides=(1, 1), padding="SAME",
        dimension_numbers=("NCHW", "OIHW", "NCHW"),
        preferred_element_type=jnp.float32)
    acts = jnp.maximum(acts + conv_b[None, :, None, None].astype(jnp.float32), 0.0)
    feat = jnp.mean(acts, axis=(2, 3))                                   # global avg pool
    c = jnp.dot(feat.astype(md), params["W_c"].T.astype(md),
                preferred_element_type=jnp.float32)
    proj_c = (c - params["proj_mean"]) / params["proj_std"]
    logits = jnp.dot(proj_c.astype(md), params["W_g"].T.astype(md),
                     preferred_element_type=jnp.float32) + params["b_g"]
    return logits, proj_c


if __name__ == "__main__":
    # Small deterministic shapes
    B, C_in, H, W = 2, 4, 16, 16
    C_feat = 32          # backbone feature dim  (W_c.shape[1])
    Nc = 40              # number of concepts    (W_c.shape[0], W_g.shape[1])
    Ncls = 8             # number of classes     (W_g.shape[0])

    key = jax.random.PRNGKey(0)
    ks = jax.random.split(key, 8)
    x = jax.random.normal(ks[0], (B, C_in, H, W), jnp.float32)
    params = {
        "conv_w": jax.random.normal(ks[1], (C_feat, C_in, 3, 3), jnp.float32) * 0.1,
        "conv_b": jax.random.normal(ks[2], (C_feat,), jnp.float32) * 0.1,
        "W_c": jax.random.normal(ks[3], (Nc, C_feat), jnp.float32) * 0.1,
        "W_g": jax.random.normal(ks[4], (Ncls, Nc), jnp.float32) * 0.1,
        "b_g": jax.random.normal(ks[5], (Ncls,), jnp.float32) * 0.1,
        "proj_mean": jax.random.normal(ks[6], (Nc,), jnp.float32) * 0.1,
        "proj_std": jnp.abs(jax.random.normal(ks[7], (Nc,), jnp.float32)) + 0.5,
    }

    logits, proj_c = jax.jit(cbm_forward)(x, params)
    jax.block_until_ready((logits, proj_c))
    assert logits.shape == (B, Ncls) and proj_c.shape == (B, Nc)

    # Matched-precision reference (same bf16 operand casts, f32 accumulation).
    ref_logits_m, ref_proj_m = cbm_reference(x, params, matmul_dtype=jnp.bfloat16)
    assert jnp.allclose(logits, ref_logits_m, atol=2e-3, rtol=2e-3)
    assert jnp.allclose(proj_c, ref_proj_m, atol=2e-3, rtol=2e-3)

    # Full-f32 semantic reference (loose tolerance for bf16 MXU operands).
    ref_logits, ref_proj = cbm_reference(x, params)
    assert jnp.allclose(logits, ref_logits, atol=3e-2, rtol=3e-2)
    assert jnp.allclose(proj_c, ref_proj, atol=3e-2, rtol=3e-2)

    print("KERNEL_OK")
</pallas_src>

<mosaic_0001>
module attributes {stable_mosaic.version = 11 : i64} {
  func.func @_cbm_fused_kernel(%arg0: i32, %arg1: i32, %arg2: memref<2048x36xbf16, #tpu.memory_space<vmem>>, %arg3: memref<36x128xbf16, #tpu.memory_space<vmem>>, %arg4: memref<1x128xf32, #tpu.memory_space<vmem>>, %arg5: memref<128x128xbf16, #tpu.memory_space<vmem>>, %arg6: memref<1x128xf32, #tpu.memory_space<vmem>>, %arg7: memref<1x128xf32, #tpu.memory_space<vmem>>, %arg8: memref<128x128xbf16, #tpu.memory_space<vmem>>, %arg9: memref<1x128xf32, #tpu.memory_space<vmem>>, %arg10: memref<8x128xf32, #tpu.memory_space<vmem>>, %arg11: memref<8x128xf32, #tpu.memory_space<vmem>>, %arg12: memref<8x128xf32, #tpu.memory_space<vmem>>) attributes {dimension_semantics = [#tpu.dimension_semantics<parallel>, #tpu.dimension_semantics<arbitrary>], iteration_bounds = array<i64: 2, 1>, scalar_prefetch = 0 : i64, scratch_operands = 1 : i64, tpu.core_type = #tpu.core_type<tc>, window_params = [{transform_indices = @transform_0, window_bounds = array<i64: 2048, 36>}, {pipeline_mode = #tpu.pipeline_mode<synchronous>, transform_indices = @transform_1, window_bounds = array<i64: 36, 128>}, {pipeline_mode = #tpu.pipeline_mode<synchronous>, transform_indices = @transform_2, window_bounds = array<i64: 1, 128>}, {pipeline_mode = #tpu.pipeline_mode<synchronous>, transform_indices = @transform_3, window_bounds = array<i64: 128, 128>}, {pipeline_mode = #tpu.pipeline_mode<synchronous>, transform_indices = @transform_4, window_bounds = array<i64: 1, 128>}, {pipeline_mode = #tpu.pipeline_mode<synchronous>, transform_indices = @transform_5, window_bounds = array<i64: 1, 128>}, {pipeline_mode = #tpu.pipeline_mode<synchronous>, transform_indices = @transform_6, window_bounds = array<i64: 128, 128>}, {pipeline_mode = #tpu.pipeline_mode<synchronous>, transform_indices = @transform_7, window_bounds = array<i64: 1, 128>}, {transform_indices = @transform_8, window_bounds = array<i64: 8, 128>}, {transform_indices = @transform_9, window_bounds = array<i64: 8, 128>}]} {
    %c0 = arith.constant 0 : index
    %c0_0 = arith.constant 0 : index
    %0 = vector.load %arg2[%c0, %c0_0] : memref<2048x36xbf16, #tpu.memory_space<vmem>>, vector<2048x36xbf16>
    %c0_1 = arith.constant 0 : index
    %c0_2 = arith.constant 0 : index
    %1 = vector.load %arg3[%c0_1, %c0_2] : memref<36x128xbf16, #tpu.memory_space<vmem>>, vector<36x128xbf16>
    %cst = arith.constant dense<0.000000e+00> : vector<2048x128xf32>
    %2 = tpu.matmul %0, %1, %cst {dimension_numbers = #tpu.dot_dimension_numbers<[1], [0], [0], [1], [0, 0, 1, 1], [], []>} : vector<2048x36xbf16>, vector<36x128xbf16>, vector<2048x128xf32> -> vector<2048x128xf32>
    %c0_3 = arith.constant 0 : index
    %c0_4 = arith.constant 0 : index
    %3 = vector.load %arg4[%c0_3, %c0_4] : memref<1x128xf32, #tpu.memory_space<vmem>>, vector<1x128xf32>
    %4 = vector.broadcast %3 : vector<1x128xf32> to vector<2048x128xf32>
    %5 = arith.addf %2, %4 : vector<2048x128xf32>
    %cst_5 = arith.constant 0.000000e+00 : f32
    %6 = vector.broadcast %cst_5 : f32 to vector<2048x128xf32>
    %7 = arith.maximumf %5, %6 : vector<2048x128xf32>
    %8 = vector.shape_cast %7 : vector<2048x128xf32> to vector<8x256x128xf32>
    %cst_6 = arith.constant dense<0.000000e+00> : vector<8x128xf32>
    %9 = vector.multi_reduction <add>, %8, %cst_6 [1] : vector<8x256x128xf32> to vector<8x128xf32>
    %cst_7 = arith.constant 2.560000e+02 : f32
    %10 = vector.broadcast %cst_7 : f32 to vector<8x128xf32>
    %11 = arith.divf %9, %10 : vector<8x128xf32>
    %c8_i32 = arith.constant 8 : i32
    %12 = arith.muli %arg1, %c8_i32 : i32
    %13 = tpu.assume_multiple %12, 8 : i32
    %14 = arith.index_cast %13 : i32 to index
    %c0_8 = arith.constant 0 : index
    %15 = vector.load %arg12[%14, %c0_8] : memref<8x128xf32, #tpu.memory_space<vmem>>, vector<8x128xf32>
    tpu.vector_store %arg12[%14, %c0_8], %11 {strides = array<i32>} : memref<8x128xf32, #tpu.memory_space<vmem>>, vector<8x128xf32>,
    %c0_i32 = arith.constant 0 : i32
    %16 = arith.cmpi eq, %arg1, %c0_i32 : i32
    %17 = arith.extui %16 : i1 to i32
    %c0_i32_9 = arith.constant 0 : i32
    %18 = arith.cmpi ne, %17, %c0_i32_9 : i32
    scf.if %18 {
      %c0_10 = arith.constant 0 : index
      %c0_11 = arith.constant 0 : index
      %19 = vector.load %arg12[%c0_10, %c0_11] : memref<8x128xf32, #tpu.memory_space<vmem>>, vector<8x128xf32>
      %20 = arith.truncf %19 : vector<8x128xf32> to vector<8x128xbf16>
      %c0_12 = arith.constant 0 : index
      %c0_13 = arith.constant 0 : index
      %21 = vector.load %arg5[%c0_12, %c0_13] : memref<128x128xbf16, #tpu.memory_space<vmem>>, vector<128x128xbf16>
      %cst_14 = arith.constant dense<0.000000e+00> : vector<8x128xf32>
      %22 = tpu.matmul %20, %21, %cst_14 {dimension_numbers = #tpu.dot_dimension_numbers<[1], [0], [0], [1], [0, 0, 1, 1], [], []>} : vector<8x128xbf16>, vector<128x128xbf16>, vector<8x128xf32> -> vector<8x128xf32>
      %c0_15 = arith.constant 0 : index
      %c0_16 = arith.constant 0 : index
      %23 = vector.load %arg6[%c0_15, %c0_16] : memref<1x128xf32, #tpu.memory_space<vmem>>, vector<1x128xf32>
      %24 = vector.broadcast %23 : vector<1x128xf32> to vector<8x128xf32>
      %25 = arith.subf %22, %24 : vector<8x128xf32>
      %c0_17 = arith.constant 0 : index
      %c0_18 = arith.constant 0 : index
      %26 = vector.load %arg7[%c0_17, %c0_18] : memref<1x128xf32, #tpu.memory_space<vmem>>, vector<1x128xf32>
      %27 = vector.broadcast %26 : vector<1x128xf32> to vector<8x128xf32>
      %28 = arith.mulf %25, %27 : vector<8x128xf32>
      %c0_19 = arith.constant 0 : index
      %c0_20 = arith.constant 0 : index
      %29 = vector.load %arg11[%c0_19, %c0_20] : memref<8x128xf32, #tpu.memory_space<vmem>>, vector<8x128xf32>
      tpu.vector_store %arg11[%c0_19, %c0_20], %28 {strides = array<i32>} : memref<8x128xf32, #tpu.memory_space<vmem>>, vector<8x128xf32>,
      %30 = arith.truncf %28 : vector<8x128xf32> to vector<8x128xbf16>
      %c0_21 = arith.constant 0 : index
      %c0_22 = arith.constant 0 : index
      %31 = vector.load %arg8[%c0_21, %c0_22] : memref<128x128xbf16, #tpu.memory_space<vmem>>, vector<128x128xbf16>
      %cst_23 = arith.constant dense<0.000000e+00> : vector<8x128xf32>
      %32 = tpu.matmul %30, %31, %cst_23 {dimension_numbers = #tpu.dot_dimension_numbers<[1], [0], [0], [1], [0, 0, 1, 1], [], []>} : vector<8x128xbf16>, vector<128x128xbf16>, vector<8x128xf32> -> vector<8x128xf32>
      %c0_24 = arith.constant 0 : index
      %c0_25 = arith.constant 0 : index
      %33 = vector.load %arg9[%c0_24, %c0_25] : memref<1x128xf32, #tpu.memory_space<vmem>>, vector<1x128xf32>
      %34 = vector.broadcast %33 : vector<1x128xf32> to vector<8x128xf32>
      %35 = arith.addf %32, %34 : vector<8x128xf32>
      %c0_26 = arith.constant 0 : index
      %c0_27 = arith.constant 0 : index
      %36 = vector.load %arg10[%c0_26, %c0_27] : memref<8x128xf32, #tpu.memory_space<vmem>>, vector<8x128xf32>
      tpu.vector_store %arg10[%c0_26, %c0_27], %35 {strides = array<i32>} : memref<8x128xf32, #tpu.memory_space<vmem>>, vector<8x128xf32>,
    } else {
    }
    return
  }
  func.func @transform_0(%arg0: i32, %arg1: i32) -> (i32, i32) {
    %c1_i32 = arith.constant 1 : i32
    %0 = arith.muli %arg0, %c1_i32 : i32
    %1 = arith.addi %0, %arg1 : i32
    %c0_i32 = arith.constant 0 : i32
    %c0_i32_0 = arith.constant 0 : i32
    return %1, %c0_i32 : i32, i32
  }
  func.func @transform_1(%arg0: i32, %arg1: i32) -> (i32, i32) {
    %c0_i32 = arith.constant 0 : i32
    %c0_i32_0 = arith.constant 0 : i32
    %c0_i32_1 = arith.constant 0 : i32
    return %c0_i32, %c0_i32_0 : i32, i32
  }
  func.func @transform_2(%arg0: i32, %arg1: i32) -> (i32, i32) {
    %c0_i32 = arith.constant 0 : i32
    %c0_i32_0 = arith.constant 0 : i32
    %c0_i32_1 = arith.constant 0 : i32
    return %c0_i32, %c0_i32_0 : i32, i32
  }
  func.func @transform_3(%arg0: i32, %arg1: i32) -> (i32, i32) {
    %c0_i32 = arith.constant 0 : i32
    %c0_i32_0 = arith.constant 0 : i32
    %c0_i32_1 = arith.constant 0 : i32
    return %c0_i32, %c0_i32_0 : i32, i32
  }
  func.func @transform_4(%arg0: i32, %arg1: i32) -> (i32, i32) {
    %c0_i32 = arith.constant 0 : i32
    %c0_i32_0 = arith.constant 0 : i32
    %c0_i32_1 = arith.constant 0 : i32
    return %c0_i32, %c0_i32_0 : i32, i32
  }
  func.func @transform_5(%arg0: i32, %arg1: i32) -> (i32, i32) {
    %c0_i32 = arith.constant 0 : i32
    %c0_i32_0 = arith.constant 0 : i32
    %c0_i32_1 = arith.constant 0 : i32
    return %c0_i32, %c0_i32_0 : i32, i32
  }
  func.func @transform_6(%arg0: i32, %arg1: i32) -> (i32, i32) {
    %c0_i32 = arith.constant 0 : i32
    %c0_i32_0 = arith.constant 0 : i32
    %c0_i32_1 = arith.constant 0 : i32
    return %c0_i32, %c0_i32_0 : i32, i32
  }
  func.func @transform_7(%arg0: i32, %arg1: i32) -> (i32, i32) {
    %c0_i32 = arith.constant 0 : i32
    %c0_i32_0 = arith.constant 0 : i32
    %c0_i32_1 = arith.constant 0 : i32
    return %c0_i32, %c0_i32_0 : i32, i32
  }
  func.func @transform_8(%arg0: i32, %arg1: i32) -> (i32, i32) {
    %c0_i32 = arith.constant 0 : i32
    %c0_i32_0 = arith.constant 0 : i32
    return %arg0, %c0_i32 : i32, i32
  }
  func.func @transform_9(%arg0: i32, %arg1: i32) -> (i32, i32) {
    %c0_i32 = arith.constant 0 : i32
    %c0_i32_0 = arith.constant 0 : i32
    return %arg0, %c0_i32 : i32, i32
  }
}

</mosaic_0001>

<bundles_post_ra>
// kernel: cbm_forward.1
= control target key start
LH: loop header
LB: loop body
LE: loop exit
PB: predicated region body
PF: predicated region fallthrough
CT: control target
= control target key end

     0   :  { %s4654_s30 = smov 0   ;;  %s4656_s10 = smov 0   ;;  %s5397_s0 = inlined_call_operand.vmem [shape: bf16[4096,36], index: 0, kind: input, shape index: {}]   ;;  %s5398_s1 = inlined_call_operand.vmem [shape: bf16[36,128], index: 1, kind: input, shape index: {}]   ;;  %s5399_s2 = inlined_call_operand.vmem [shape: f32[1,128], index: 2, kind: input, shape index: {}]   ;;  %s5400_s3 = inlined_call_operand.vmem [shape: bf16[128,128], index: 3, kind: input, shape index: {}]   ;;  %s5401_s4 = inlined_call_operand.vmem [shape: f32[1,128], index: 4, kind: input, shape index: {}]   ;;  %s5402_s5 = inlined_call_operand.vmem [shape: f32[1,128], index: 5, kind: input, shape index: {}]   ;;  %s5403_s6 = inlined_call_operand.vmem [shape: bf16[128,128], index: 6, kind: input, shape index: {}]   ;;  %s5404_s7 = inlined_call_operand.vmem [shape: f32[1,128], index: 7, kind: input, shape index: {}]   ;;  %s5405_s8 = inlined_call_operand.vmem [shape: f32[16,128], index: 8, kind: output, shape index: {0}]   ;;  %s5406_s9 = inlined_call_operand.vmem [shape: f32[16,128], index: 9, kind: output, shape index: {1}]  }
   0x1   :  { %s4658_s11 = smov 0  }
   0x2 LB: > { %s32_s12 = sadd.s32 1, %s4596_s10  ;;  %p3658_p0 = scmp.ge.s32.totalorder %s4600_s11, 1  ;;  %s4600_s11 = sphi %s4658_s11, %s20_s11   ;;  %s4596_s10 = sphi %s4656_s10, %s5408_s10   ;;  %s4592_s30 = sphi %s4654_s30, %s5407_s30  }
   0x3   : > { %p34_p1 = scmp.ge.s32.totalorder %s32_s12, 2  ;;  %p307_p2 = scmp.lt.s32.totalorder %s4600_s11, 3 }
   0x5   : > { %s5410_s12 = smov (%p34_p1, %s32_s12), 0  ;;  %p308_p3 = pnand %p3658_p0, %p307_p2 }
   0x6   : > { %v4429_v0 = vld [vmem:[%s5398_s1] sm:$0xff] (!%p308_p3)   ;;  %v4430_v1 = vld [vmem:[%s5398_s1 + $0x8] sm:$0xff] (!%p308_p3)   ;;  %s3659_s17 = sshll.u32 (!%p308_p3), %s4592_s30, 8  ;;  %v4431_v2 = vld [vmem:[%s5398_s1 + $0x10] ss:$0 sps:$4 sm:$0x33] (!%p308_p3)  }
   0x7   : > { %311 = sbr.rel (%p308_p3) target bundleno = 1009 (0x3f1), region = 52  ;;  %4093 = vmatprep.subr.bf16.mxu0 (!%p308_p3), %v4429_v0  ;;  %p349_p4 = scmp.lt.s32.totalorder (!%p308_p3), %s3659_s17, 511  ;;  %4395 = vmatprep.subr.bf16.mxu1 (!%p308_p3), %v4429_v0  ;;  %vm1672_vm0 = vcmask (!%p308_p3), 1041408   ;;  %vm1287_vm1 = vcmask (!%p308_p3), 293888   ;;  %vm3303_vm2 = vcmask (!%p308_p3), 1041409   ;;  %vm4603_vm3 = vmmov (!%p308_p3), 0  }
   0x8   : > { %4094 = vmatpush3.bf16.msra.mxu0 (!%p308_p3), %v4429_v0  ;;  %4398 = vmatpush3.bf16.msra.mxu1 (!%p308_p3), %v4429_v0  ;;  %v1674_v3 = vsel (!%p308_p3), %vm1672_vm0, %v4431_v2, 0  ;;  %vm3305_vm4 = vcmask (!%p308_p3), 1042434   ;;  %vm3307_vm5 = vcmask (!%p308_p3), 1043459   ;;  %vm3309_vm6 = vcmask (!%p308_p3), 1044484   ;;  %p355_p5 = scmp.lt.s32.totalorder (!%p308_p3), %s4592_s30, 1 }
   0x9   : > { %4095 = vmatprep.subr.bf16.mxu0 (!%p308_p3), %v4430_v1  ;;  %4396 = vmatprep.subr.bf16.mxu1 (!%p308_p3), %v4430_v1  ;;  %vm3311_vm7 = vcmask (!%p308_p3), 1045509   ;;  %vm3313_vm8 = vcmask (!%p308_p3), 1046534   ;;  %vm3315_vm9 = vcmask (!%p308_p3), 1047559  }
   0xc   : > { %4096 = vmatpush3.bf16.msra.mxu0 (!%p308_p3), %v4430_v1  ;;  %4399 = vmatpush3.bf16.msra.mxu1 (!%p308_p3), %v4430_v1 }
   0xd   : > { %4401 = vmatprep.subr.msk.bf16.mxu0 (!%p308_p3), %vm1672_vm0, %v4431_v2  ;;  %4402 = vmatprep.subr.msk.bf16.mxu1 (!%p308_p3), %vm1672_vm0, %v4431_v2 }
   0xe   : > { %s5412_s17 = smov (!%p349_p4, %s3659_s17), 511  ;;  %s5414_s30 = smov (!%p355_p5, %s4592_s30), 1 }
   0xf   : > { %s3660_s20 = sshll.u32 %s5412_s17, 2  ;;  %s3661_s13 = sshll.u32 %s5414_s30, 3 }
  0x10   : > { %s4687_s23 = scalar_lea.vmem %s5397_s0, %s3660_s20  ;;  %4098 = vmatpush3.bf16.msra.mxu0 %v1674_v3  ;;  %4400 = vmatpush3.bf16.msra.mxu1 %v1674_v3  ;;  %s362_s18 = scalar_lea.vmem %s5406_s9, %s3661_s13 }
  0x11   : > { %v4432_v4 = vld [vmem:[%s4687_s23] sm:$0xff]   ;;  %v4433_v5 = vld [vmem:[%s4687_s23 + $0x8] sm:$0xff]   ;;  %v4434_v6 = vld [vmem:[%s4687_s23 + $0x10] sm:$0xff]   ;;  %s358_s22 = scalar_lea.vmem %s5405_s8, %s3661_s13 }
  0x12   : > { %4099 = vmatprep.mubr.msk.bf16.mxu0 %vm1287_vm1, %v4432_v4  ;;  %v4435_v7 = vld [vmem:[%s4687_s23 + $0x18] sm:$0xff]   ;;  %v4436_v8 = vld [vmem:[%s4687_s23 + $0x20] sm:$0xff]   ;;  %v4437_v9 = vld [vmem:[%s4687_s23 + $0x28] sm:$0xff]  }
  0x13   : > { %4100 = vmatmul.mubr.msk.bf16.vlgmr.msra.gmra.mrb[0].mxu0 %vm1287_vm1, %v4433_v5  ;;  %v4438_v10 = vld [vmem:[%s4687_s23 + $0x30] sm:$0xff]   ;;  %v4453_v12 = vld [vmem:[%s4687_s23 + $0x238] sm:$0xff]   ;;  %v4456_v13 = vld [vmem:[%s4687_s23 + $0x240] sm:$0xff]  }
  0x14   : > { %4103 = vmatprep.mubr.msk.bf16.mxu0 %vm1287_vm1, %v4434_v6  ;;  %v4452_v11 = vld [vmem:[%s4687_s23 + $0x230] sm:$0xff]   ;;  %v4439_v14 = vld [vmem:[%s4687_s23 + $0x38] sm:$0xff]   ;;  %v4440_v15 = vld [vmem:[%s4687_s23 + $0x40] sm:$0xff]  }
  0x15   : > { %4239 = vmatprep.mubr.msk.bf16.mxu1 %vm1287_vm1, %v4452_v11  ;;  %v4457_v16 = vld [vmem:[%s4687_s23 + $0x248] sm:$0xff]   ;;  %v4460_v17 = vld [vmem:[%s4687_s23 + $0x250] sm:$0xff]   ;;  %v4461_v20 = vld [vmem:[%s4687_s23 + $0x258] sm:$0xff]  }
  0x16   : > { %4240 = vmatmul.mubr.msk.bf16.vlgmr.msra.gmra.mrb[0].mxu1 %vm1287_vm1, %v4453_v12  ;;  %v4441_v18 = vld [vmem:[%s4687_s23 + $0x48] sm:$0xff]   ;;  %v4442_v19 = vld [vmem:[%s4687_s23 + $0x50] sm:$0xff]   ;;  %v4464_v21 = vld [vmem:[%s4687_s23 + $0x260] sm:$0xff]  }
  0x17   : > { %4243 = vmatprep.mubr.msk.bf16.mxu1 %vm1287_vm1, %v4456_v13  ;;  %v4443_v22 = vld [vmem:[%s4687_s23 + $0x58] sm:$0xff]   ;;  %v4444_v23 = vld [vmem:[%s4687_s23 + $0x60] sm:$0xff]   ;;  %v4465_v24 = vld [vmem:[%s4687_s23 + $0x268] sm:$0xff]  }
  0x18   : > { %v4468_v25 = vld [vmem:[%s4687_s23 + $0x270] sm:$0xff]   ;;  %v4445_v26 = vld [vmem:[%s4687_s23 + $0x68] sm:$0xff]   ;;  %v4469_v28 = vld [vmem:[%s4687_s23 + $0x278] sm:$0xff]  }
  0x19   : > { %v4446_v27 = vld [vmem:[%s4687_s23 + $0x70] sm:$0xff]   ;;  %v4472_v29 = vld [vmem:[%s4687_s23 + $0x280] sm:$0xff]   ;;  %v4447_v30 = vld [vmem:[%s4687_s23 + $0x78] sm:$0xff]  }
  0x1a   : > { %v4448_v31 = vld [vmem:[%s4687_s23 + $0x80] sm:$0xff]   ;;  %v4473_v32 = vld [vmem:[%s4687_s23 + $0x288] sm:$0xff]   ;;  %v4476_v33 = vld [vmem:[%s4687_s23 + $0x290] sm:$0xff]  }
  0x1b   : > { %4104 = vmatmul.mubr.msk.bf16.gmra.mrb[4].mxu0 %vm1287_vm1, %v4435_v7  ;;  %v4449_v34 = vld [vmem:[%s4687_s23 + $0x88] sm:$0xff]   ;;  %v4450_v35 = vld [vmem:[%s4687_s23 + $0x90] sm:$0xff]   ;;  %v4477_v36 = vld [vmem:[%s4687_s23 + $0x298] sm:$0xff]  }
  0x1c   : > { %4107 = vmatprep.mubr.msk.bf16.mxu0 %vm1287_vm1, %v4436_v8  ;;  %v4480_v37 = vld [vmem:[%s4687_s23 + $0x2a0] sm:$0xff]   ;;  %v4451_v38 = vld [vmem:[%s4687_s23 + $0x98] sm:$0xff]   ;;  %v4481_v40 = vld [vmem:[%s4687_s23 + $0x2a8] sm:$0xff]  }
  0x1d   : > { %v4454_v39 = vld [vmem:[%s4687_s23 + $0xa0] sm:$0xff]   ;;  %v4484_v41 = vld [vmem:[%s4687_s23 + $0x2b0] sm:$0xff]   ;;  %v4455_v42 = vld [vmem:[%s4687_s23 + $0xa8] sm:$0xff]  }
  0x1e   : > { %4244 = vmatmul.mubr.msk.bf16.gmra.mrb[4].mxu1 %vm1287_vm1, %v4457_v16  ;;  %v4458_v43 = vld [vmem:[%s4687_s23 + $0xb0] sm:$0xff]   ;;  %v4485_v44 = vld [vmem:[%s4687_s23 + $0x2b8] sm:$0xff]   ;;  %v4488_v45 = vld [vmem:[%s4687_s23 + $0x2c0] sm:$0xff]  }
  0x1f   : > { %4247 = vmatprep.mubr.msk.bf16.mxu1 %vm1287_vm1, %v4460_v17  ;;  %v4459_v46 = vld [vmem:[%s4687_s23 + $0xb8] sm:$0xff]   ;;  %v4462_v47 = vld [vmem:[%s4687_s23 + $0xc0] sm:$0xff]   ;;  %v4489_v48 = vld [vmem:[%s4687_s23 + $0x2c8] sm:$0xff]  }
  0x20   : > { %v4492_v49 = vld [vmem:[%s4687_s23 + $0x2d0] sm:$0xff]   ;;  %v4463_v50 = vld [vmem:[%s4687_s23 + $0xc8] sm:$0xff]   ;;  %v4493_v52 = vld [vmem:[%s4687_s23 + $0x2d8] sm:$0xff]  }
  0x21   : > { %v4466_v51 = vld [vmem:[%s4687_s23 + $0xd0] sm:$0xff]   ;;  %v4496_v53 = vld [vmem:[%s4687_s23 + $0x2e0] sm:$0xff]   ;;  %v4467_v54 = vld [vmem:[%s4687_s23 + $0xd8] sm:$0xff]  }
  0x22   : > { %v4470_v55 = vld [vmem:[%s4687_s23 + $0xe0] sm:$0xff]   ;;  %v4497_v56 = vld [vmem:[%s4687_s23 + $0x2e8] sm:$0xff]   ;;  %v4500_v57 = vld [vmem:[%s4687_s23 + $0x2f0] sm:$0xff]  }
  0x23   : > { %4108 = vmatmul.mubr.msk.bf16.gmra.mrb[8].mxu0 %vm1287_vm1, %v4437_v9  ;;  %v4471_v58 = vld [vmem:[%s4687_s23 + $0xe8] sm:$0xff]   ;;  %v4474_v59 = vld [vmem:[%s4687_s23 + $0xf0] sm:$0xff]   ;;  %v4501_v60 = vld [vmem:[%s4687_s23 + $0x2f8] sm:$0xff]  }
  0x24   : > { %4111 = vmatprep.mubr.msk.bf16.mxu0 %vm1287_vm1, %v4438_v10  ;;  %v4504_v61 = vld [vmem:[%s4687_s23 + $0x300] sm:$0xff]   ;;  %v4475_v62 = vld [vmem:[%s4687_s23 + $0xf8] sm:$0xff]   ;;  %v4505_v0 = vld [vmem:[%s4687_s23 + $0x308] sm:$0xff]  }
  0x25   : > { %v4478_v63 = vld [vmem:[%s4687_s23 + $0x100] sm:$0xff]   ;;  %v4508_v1 = vld [vmem:[%s4687_s23 + $0x310] sm:$0xff]   ;;  %v4479_v2 = vld [vmem:[%s4687_s23 + $0x108] sm:$0xff]  }
  0x26   : > { %4248 = vmatmul.mubr.msk.bf16.gmra.mrb[8].mxu1 %vm1287_vm1, %v4461_v20  ;;  %v4482_v3 = vld [vmem:[%s4687_s23 + $0x110] sm:$0xff]   ;;  %v4509_v4 = vld [vmem:[%s4687_s23 + $0x318] sm:$0xff]   ;;  %v4512_v5 = vld [vmem:[%s4687_s23 + $0x320] sm:$0xff]  }
  0x27   : > { %4251 = vmatprep.mubr.msk.bf16.mxu1 %vm1287_vm1, %v4464_v21  ;;  %v4483_v6 = vld [vmem:[%s4687_s23 + $0x118] sm:$0xff]   ;;  %v4486_v7 = vld [vmem:[%s4687_s23 + $0x120] sm:$0xff]   ;;  %v4513_v8 = vld [vmem:[%s4687_s23 + $0x328] sm:$0xff]  }
  0x28   : > { %v4516_v9 = vld [vmem:[%s4687_s23 + $0x330] sm:$0xff]   ;;  %v4487_v10 = vld [vmem:[%s4687_s23 + $0x128] sm:$0xff]   ;;  %v4517_v12 = vld [vmem:[%s4687_s23 + $0x338] sm:$0xff]  }
  0x29   : > { %v4490_v11 = vld [vmem:[%s4687_s23 + $0x130] sm:$0xff]   ;;  %v4520_v13 = vld [vmem:[%s4687_s23 + $0x340] sm:$0xff]   ;;  %v4521_v16 = vld [vmem:[%s4687_s23 + $0x348] sm:$0xff]  }
  0x2a   : > { %v4524_v17 = vld [vmem:[%s4687_s23 + $0x350] sm:$0xff]   ;;  %v4525_v20 = vld [vmem:[%s4687_s23 + $0x358] sm:$0xff]   ;;  %v4528_v21 = vld [vmem:[%s4687_s23 + $0x360] sm:$0xff]  }
  0x2b   : > { %4112 = vmatmul.mubr.msk.bf16.gmra.mrb[12].mxu0 %vm1287_vm1, %v4439_v14  ;;  %v4491_v14 = vld [vmem:[%s4687_s23 + $0x138] sm:$0xff]  }
  0x2c   : > { %4115 = vmatprep.mubr.msk.bf16.mxu0 %vm1287_vm1, %v4440_v15  ;;  %v4494_v15 = vld [vmem:[%s4687_s23 + $0x140] sm:$0xff]  }
  0x2e   : > { %4252 = vmatmul.mubr.msk.bf16.gmra.mrb[12].mxu1 %vm1287_vm1, %v4465_v24  ;;  %v4529_v24 = vld [vmem:[%s4687_s23 + $0x368] sm:$0xff]  }
  0x2f   : > { %4255 = vmatprep.mubr.msk.bf16.mxu1 %vm1287_vm1, %v4468_v25  ;;  %v4532_v25 = vld [vmem:[%s4687_s23 + $0x370] sm:$0xff]  }
  0x33   : > { %4116 = vmatmul.mubr.msk.bf16.gmra.mrb[16].mxu0 %vm1287_vm1, %v4441_v18  ;;  %v4495_v18 = vld [vmem:[%s4687_s23 + $0x148] sm:$0xff]  }
  0x34   : > { %4119 = vmatprep.mubr.msk.bf16.mxu0 %vm1287_vm1, %v4442_v19  ;;  %v4498_v19 = vld [vmem:[%s4687_s23 + $0x150] sm:$0xff]  }
  0x36   : > { %4256 = vmatmul.mubr.msk.bf16.gmra.mrb[16].mxu1 %vm1287_vm1, %v4469_v28  ;;  %v4533_v28 = vld [vmem:[%s4687_s23 + $0x378] sm:$0xff]  }
  0x37   : > { %4259 = vmatprep.mubr.msk.bf16.mxu1 %vm1287_vm1, %v4472_v29  ;;  %v4536_v29 = vld [vmem:[%s4687_s23 + $0x380] sm:$0xff]  }
  0x3b   : > { %4120 = vmatmul.mubr.msk.bf16.gmra.mrb[20].mxu0 %vm1287_vm1, %v4443_v22  ;;  %v4499_v22 = vld [vmem:[%s4687_s23 + $0x158] sm:$0xff]  }
  0x3c   : > { %4123 = vmatprep.mubr.msk.bf16.mxu0 %vm1287_vm1, %v4444_v23  ;;  %v4502_v23 = vld [vmem:[%s4687_s23 + $0x160] sm:$0xff]  }
  0x3e   : > { %4260 = vmatmul.mubr.msk.bf16.gmra.mrb[20].mxu1 %vm1287_vm1, %v4473_v32  ;;  %v4537_v32 = vld [vmem:[%s4687_s23 + $0x388] sm:$0xff]  }
  0x3f   : > { %4263 = vmatprep.mubr.msk.bf16.mxu1 %vm1287_vm1, %v4476_v33  ;;  %v4540_v33 = vld [vmem:[%s4687_s23 + $0x390] sm:$0xff]  }
  0x43   : > { %4124 = vmatmul.mubr.msk.bf16.gmra.mrb[24].mxu0 %vm1287_vm1, %v4445_v26  ;;  %v4503_v26 = vld [vmem:[%s4687_s23 + $0x168] sm:$0xff]  }
  0x44   : > { %4127 = vmatprep.mubr.msk.bf16.mxu0 %vm1287_vm1, %v4446_v27  ;;  %v4506_v27 = vld [vmem:[%s4687_s23 + $0x170] sm:$0xff]  }
  0x46   : > { %4264 = vmatmul.mubr.msk.bf16.gmra.mrb[24].mxu1 %vm1287_vm1, %v4477_v36  ;;  %v4541_v36 = vld [vmem:[%s4687_s23 + $0x398] sm:$0xff]  }
  0x47   : > { %4267 = vmatprep.mubr.msk.bf16.mxu1 %vm1287_vm1, %v4480_v37  ;;  %v4544_v37 = vld [vmem:[%s4687_s23 + $0x3a0] sm:$0xff]  }
  0x4b   : > { %4128 = vmatmul.mubr.msk.bf16.gmra.mrb[28].mxu0 %vm1287_vm1, %v4447_v30  ;;  %v4507_v30 = vld [vmem:[%s4687_s23 + $0x178] sm:$0xff]  }
  0x4c   : > { %4131 = vmatprep.mubr.msk.bf16.mxu0 %vm1287_vm1, %v4448_v31  ;;  %v4510_v31 = vld [vmem:[%s4687_s23 + $0x180] sm:$0xff]  }
  0x4e   : > { %4268 = vmatmul.mubr.msk.bf16.gmra.mrb[28].mxu1 %vm1287_vm1, %v4481_v40  ;;  %v4545_v40 = vld [vmem:[%s4687_s23 + $0x3a8] sm:$0xff]  }
  0x4f   : > { %4271 = vmatprep.mubr.msk.bf16.mxu1 %vm1287_vm1, %v4484_v41  ;;  %v4548_v41 = vld [vmem:[%s4687_s23 + $0x3b0] sm:$0xff]  }
  0x53   : > { %4132 = vmatmul.mubr.msk.bf16.gmra.mrb[32].mxu0 %vm1287_vm1, %v4449_v34  ;;  %v4511_v34 = vld [vmem:[%s4687_s23 + $0x188] sm:$0xff]  }
  0x54   : > { %4135 = vmatprep.mubr.msk.bf16.mxu0 %vm1287_vm1, %v4450_v35  ;;  %v4514_v35 = vld [vmem:[%s4687_s23 + $0x190] sm:$0xff]  }
  0x56   : > { %4272 = vmatmul.mubr.msk.bf16.gmra.mrb[32].mxu1 %vm1287_vm1, %v4485_v44  ;;  %v4519_v44 = vld [vmem:[%s4687_s23 + $0x1a8] sm:$0xff]  }
  0x57   : > { %4275 = vmatprep.mubr.msk.bf16.mxu1 %vm1287_vm1, %v4488_v45  ;;  %v4522_v45 = vld [vmem:[%s4687_s23 + $0x1b0] sm:$0xff]  }
  0x5b   : > { %4136 = vmatmul.mubr.msk.bf16.gmra.mrb[36].mxu0 %vm1287_vm1, %v4451_v38  ;;  %v4515_v38 = vld [vmem:[%s4687_s23 + $0x198] sm:$0xff]  }
  0x5c   : > { %4139 = vmatprep.mubr.msk.bf16.mxu0 %vm1287_vm1, %v4454_v39  ;;  %v4518_v39 = vld [vmem:[%s4687_s23 + $0x1a0] sm:$0xff]  }
  0x5e   : > { %4276 = vmatmul.mubr.msk.bf16.gmra.mrb[36].mxu1 %vm1287_vm1, %v4489_v48  ;;  %v4908_v48 = vld [vmem:[%s5399_s2] ss:$0 sm:$0xff] }
  0x5f   : > { %4279 = vmatprep.mubr.msk.bf16.mxu1 %vm1287_vm1, %v4492_v49 }
  0x63   : > { %4140 = vmatmul.mubr.msk.bf16.gmra.mrb[40].mxu0 %vm1287_vm1, %v4455_v42  ;;  %v4560_v42 = vld [vmem:[%s5400_s3] sm:$0xff]  }
  0x64   : > { %4143 = vmatprep.mubr.msk.bf16.mxu0 %vm1287_vm1, %v4458_v43  ;;  %v4602_v43 = vmov 0.0  }
  0x65   : > { %4355 = vmatprep.subr.bf16.mxu1 %v4602_v43 }
  0x66   : > { %4280 = vmatmul.mubr.msk.bf16.gmra.mrb[40].mxu1 %vm1287_vm1, %v4493_v52 }
  0x67   : > { %4283 = vmatprep.mubr.msk.bf16.mxu1 %vm1287_vm1, %v4496_v53  ;;  %4356 = vmatpush3.bf16.msra.mxu1 %v4560_v42 }
  0x68   : > { %4357 = vmatprep.subr.bf16.mxu1 %v4602_v43 }
  0x6b   : > { %4144 = vmatmul.mubr.msk.bf16.gmra.mrb[44].mxu0 %vm1287_vm1, %v4459_v46  ;;  %v4549_v46 = vld [vmem:[%s4687_s23 + $0x3b8] sm:$0xff]  }
  0x6c   : > { %4147 = vmatprep.mubr.msk.bf16.mxu0 %vm1287_vm1, %v4462_v47  ;;  %v4552_v47 = vld [vmem:[%s4687_s23 + $0x3c0] sm:$0xff]  }
  0x6e   : > { %4284 = vmatmul.mubr.msk.bf16.gmra.mrb[44].mxu1 %vm1287_vm1, %v4497_v56 }
  0x6f   : > { %4287 = vmatprep.mubr.msk.bf16.mxu1 %vm1287_vm1, %v4500_v57  ;;  %v4554_v57 = vld [vmem:[%s4687_s23 + $0x3d0] sm:$0xff]  }
  0x73   : > { %4148 = vmatmul.mubr.msk.bf16.gmra.mrb[48].mxu0 %vm1287_vm1, %v4463_v50 }
  0x74   : > { %4151 = vmatprep.mubr.msk.bf16.mxu0 %vm1287_vm1, %v4466_v51  ;;  %v4523_v51 = vld [vmem:[%s4687_s23 + $0x1b8] sm:$0xff]  }
  0x76   : > { %4288 = vmatmul.mubr.msk.bf16.gmra.mrb[48].mxu1 %vm1287_vm1, %v4501_v60 }
  0x77   : > { %4291 = vmatprep.mubr.msk.bf16.mxu1 %vm1287_vm1, %v4504_v61 }
  0x7b   : > { %4152 = vmatmul.mubr.msk.bf16.gmra.mrb[52].mxu0 %vm1287_vm1, %v4467_v54  ;;  %v4526_v54 = vld [vmem:[%s4687_s23 + $0x1c0] sm:$0xff]  }
  0x7c   : > { %4155 = vmatprep.mubr.msk.bf16.mxu0 %vm1287_vm1, %v4470_v55  ;;  %v4553_v55 = vld [vmem:[%s4687_s23 + $0x3c8] sm:$0xff]  }
  0x7e   : > { %4292 = vmatmul.mubr.msk.bf16.gmra.mrb[52].mxu1 %vm1287_vm1, %v4505_v0 }
  0x7f   : > { %4295 = vmatprep.mubr.msk.bf16.mxu1 %vm1287_vm1, %v4508_v1 }
  0x83   : > { %4156 = vmatmul.mubr.msk.bf16.gmra.mrb[56].mxu0 %vm1287_vm1, %v4471_v58 }
  0x84   : > { %4159 = vmatprep.mubr.msk.bf16.mxu0 %vm1287_vm1, %v4474_v59 }
  0x86   : > { %4296 = vmatmul.mubr.msk.bf16.gmra.mrb[56].mxu1 %vm1287_vm1, %v4509_v4 }
  0x87   : > { %4299 = vmatprep.mubr.msk.bf16.mxu1 %vm1287_vm1, %v4512_v5 }
  0x8b   : > { %4160 = vmatmul.mubr.msk.bf16.gmra.mrb[60].mxu0 %vm1287_vm1, %v4475_v62 }
  0x8c   : > { %4163 = vmatprep.mubr.msk.bf16.mxu0 %vm1287_vm1, %v4478_v63 }
  0x8e   : > { %4300 = vmatmul.mubr.msk.bf16.gmra.mrb[60].mxu1 %vm1287_vm1, %v4513_v8  ;;  %v4530_v8 = vld [vmem:[%s4687_s23 + $0x1d0] sm:$0xff]  }
  0x8f   : > { %4303 = vmatprep.mubr.msk.bf16.mxu1 %vm1287_vm1, %v4516_v9  ;;  %v4555_v9 = vld [vmem:[%s4687_s23 + $0x3d8] sm:$0xff]  }
  0x93   : > { %4164 = vmatmul.mubr.msk.bf16.gmra.mrb[64].mxu0 %vm1287_vm1, %v4479_v2 }
  0x94   : > { %4167 = vmatprep.mubr.msk.bf16.mxu0 %vm1287_vm1, %v4482_v3  ;;  %v4527_v3 = vld [vmem:[%s4687_s23 + $0x1c8] sm:$0xff]  }
  0x96   : > { %4304 = vmatmul.mubr.msk.bf16.gmra.mrb[64].mxu1 %vm1287_vm1, %v4517_v12 }
  0x97   : > { %4307 = vmatprep.mubr.msk.bf16.mxu1 %vm1287_vm1, %v4520_v13 }
  0x9b   : > { %4168 = vmatmul.mubr.msk.bf16.gmra.mrb[68].mxu0 %vm1287_vm1, %v4483_v6 }
  0x9c   : > { %4171 = vmatprep.mubr.msk.bf16.mxu0 %vm1287_vm1, %v4486_v7 }
  0x9e   : > { %4308 = vmatmul.mubr.msk.bf16.gmra.mrb[68].mxu1 %vm1287_vm1, %v4521_v16 }
  0x9f   : > { %4311 = vmatprep.mubr.msk.bf16.mxu1 %vm1287_vm1, %v4524_v17 }
  0xa3   : > { %4172 = vmatmul.mubr.msk.bf16.gmra.mrb[72].mxu0 %vm1287_vm1, %v4487_v10 }
  0xa4   : > { %4175 = vmatprep.mubr.msk.bf16.mxu0 %vm1287_vm1, %v4490_v11  ;;  %v4556_v11 = vld [vmem:[%s4687_s23 + $0x3e0] sm:$0xff]  }
  0xa6   : > { %4312 = vmatmul.mubr.msk.bf16.gmra.mrb[72].mxu1 %vm1287_vm1, %v4525_v20 }
  0xa7   : > { %4315 = vmatprep.mubr.msk.bf16.mxu1 %vm1287_vm1, %v4528_v21 }
  0xab   : > { %4176 = vmatmul.mubr.msk.bf16.gmra.mrb[76].mxu0 %vm1287_vm1, %v4491_v14 }
  0xac   : > { %4179 = vmatprep.mubr.msk.bf16.mxu0 %vm1287_vm1, %v4494_v15 }
  0xae   : > { %4316 = vmatmul.mubr.msk.bf16.gmra.mrb[76].mxu1 %vm1287_vm1, %v4529_v24 }
  0xaf   : > { %4319 = vmatprep.mubr.msk.bf16.mxu1 %vm1287_vm1, %v4532_v25 }
  0xb3   : > { %4180 = vmatmul.mubr.msk.bf16.gmra.mrb[80].mxu0 %vm1287_vm1, %v4495_v18 }
  0xb4   : > { %4183 = vmatprep.mubr.msk.bf16.mxu0 %vm1287_vm1, %v4498_v19 }
  0xb6   : > { %4320 = vmatmul.mubr.msk.bf16.gmra.mrb[80].mxu1 %vm1287_vm1, %v4533_v28 }
  0xb7   : > { %4323 = vmatprep.mubr.msk.bf16.mxu1 %vm1287_vm1, %v4536_v29  ;;  %v4534_v29 = vld [vmem:[%s4687_s23 + $0x1e0] sm:$0xff]  }
  0xbb   : > { %4184 = vmatmul.mubr.msk.bf16.gmra.mrb[84].mxu0 %vm1287_vm1, %v4499_v22 }
  0xbc   : > { %4187 = vmatprep.mubr.msk.bf16.mxu0 %vm1287_vm1, %v4502_v23  ;;  %v4531_v23 = vld [vmem:[%s4687_s23 + $0x1d8] sm:$0xff]  }
  0xbe   : > { %4324 = vmatmul.mubr.msk.bf16.gmra.mrb[84].mxu1 %vm1287_vm1, %v4537_v32 }
  0xbf   : > { %4327 = vmatprep.mubr.msk.bf16.mxu1 %vm1287_vm1, %v4540_v33 }
  0xc3   : > { %4188 = vmatmul.mubr.msk.bf16.gmra.mrb[88].mxu0 %vm1287_vm1, %v4503_v26 }
  0xc4   : > { %4191 = vmatprep.mubr.msk.bf16.mxu0 %vm1287_vm1, %v4506_v27 }
  0xc6   : > { %4328 = vmatmul.mubr.msk.bf16.gmra.mrb[88].mxu1 %vm1287_vm1, %v4541_v36 }
  0xc7   : > { %4331 = vmatprep.mubr.msk.bf16.mxu1 %vm1287_vm1, %v4544_v37 }
  0xcb   : > { %4192 = vmatmul.mubr.msk.bf16.gmra.mrb[92].mxu0 %vm1287_vm1, %v4507_v30  ;;  %v4557_v30 = vld [vmem:[%s4687_s23 + $0x3e8] sm:$0xff]  }
  0xcc   : > { %4195 = vmatprep.mubr.msk.bf16.mxu0 %vm1287_vm1, %v4510_v31 }
  0xce   : > { %4332 = vmatmul.mubr.msk.bf16.gmra.mrb[92].mxu1 %vm1287_vm1, %v4545_v40  ;;  %v4561_v40 = vld [vmem:[%s5400_s3 + $0x8] sm:$0xff]  }
  0xcf   : > { %4335 = vmatprep.mubr.msk.bf16.mxu1 %vm1287_vm1, %v4548_v41  ;;  %4358 = vmatpush3.bf16.msra.mxu1 %v4561_v40 }
  0xd0   : > { %4359 = vmatprep.subr.bf16.mxu1 %v4602_v43 }
  0xd3   : > { %4196 = vmatmul.mubr.msk.bf16.gmra.mrb[96].mxu0 %vm1287_vm1, %v4511_v34  ;;  %v4558_v34 = vld [vmem:[%s4687_s23 + $0x3f0] sm:$0xff]  }
  0xd4   : > { %4199 = vmatprep.mubr.msk.bf16.mxu0 %vm1287_vm1, %v4514_v35 }
  0xd6   : > { %4336 = vmatmul.mubr.msk.bf16.gmra.mrb[96].mxu1 %vm1287_vm1, %v4549_v46 }
  0xd7   : > { %4339 = vmatprep.mubr.msk.bf16.mxu1 %vm1287_vm1, %v4552_v47 }
  0xdb   : > { %4200 = vmatmul.mubr.msk.bf16.gmra.mrb[100].mxu0 %vm1287_vm1, %v4515_v38 }
  0xdc   : > { %4203 = vmatprep.mubr.msk.bf16.mxu0 %vm1287_vm1, %v4518_v39 }
  0xde   : > { %4340 = vmatmul.mubr.msk.bf16.gmra.mrb[100].mxu1 %vm1287_vm1, %v4553_v55 }
  0xdf   : > { %4343 = vmatprep.mubr.msk.bf16.mxu1 %vm1287_vm1, %v4554_v57  ;;  %v4559_v57 = vld [vmem:[%s4687_s23 + $0x3f8] sm:$0xff]  }
  0xe3   : > { %4204 = vmatmul.mubr.msk.bf16.gmra.mrb[104].mxu0 %vm1287_vm1, %v4519_v44 }
  0xe4   : > { %4207 = vmatprep.mubr.msk.bf16.mxu0 %vm1287_vm1, %v4522_v45 }
  0xe6   : > { %v4101_v49 = vpop.f32.mrb[0].mxu0  ;;  %4344 = vmatmul.mubr.msk.bf16.gmra.mrb[104].mxu1 %vm1287_vm1, %v4555_v9  ;;  %v4539_v9 = vld [vmem:[%s4687_s23 + $0x1f8] sm:$0xff]  }
  0xe7   : > { %v1710_v50 = vpop.f32.mrb[1].mxu0  ;;  %v1719_v58 = vadd.f32 %v4101_v49, %v4908_v48  ;;  %4347 = vmatprep.mubr.msk.bf16.mxu1 %vm1287_vm1, %v4556_v11 }
  0xe8   : > { %v1711_v52 = vadd.f32 %v4908_v48, %v1710_v50  ;;  %v4102_v53 = vpop.f32.mrb[2].mxu0  ;;  %v4535_v50 = vld [vmem:[%s4687_s23 + $0x1e8] sm:$0xff]  }
  0xe9   : > { %v1713_v56 = vpop.f32.mrb[3].mxu0  ;;  %v1722_v61 = vadd.f32 %v4102_v53, %v4908_v48  ;;  %v2735_v63 = vmax.f32 %v1719_v58, 0.0  ;;  %v4936_v24 = vpop.f32.mrb[0].mxu1 }
  0xea   : > { %v1714_v59 = vadd.f32 %v4908_v48, %v1713_v56  ;;  %v2733_v60 = vmax.f32 %v1711_v52, 0.0  ;;  %v4941_v31 = vpop.f32.mrb[1].mxu1  ;;  %v4538_v56 = vld [vmem:[%s4687_s23 + $0x1f0] sm:$0xff]  }
  0xeb   : > { %4208 = vmatmul.mubr.msk.bf16.gmra.mrb[108].mxu0 %vm1287_vm1, %v4523_v51  ;;  %v2736_v4 = vmax.f32 %v1722_v61, 0.0  ;;  %v4943_v33 = vpop.f32.mrb[2].mxu1 }
  0xec   : > { %v2734_v62 = vmax.f32 %v1714_v59, 0.0  ;;  %4211 = vmatprep.mubr.msk.bf16.mxu0 %vm1287_vm1, %v4526_v54  ;;  %v4948_v39 = vpop.f32.mrb[3].mxu1 }
  0xee   : > { %v2989_v0 = vadd.f32 %v2734_v62, %v2733_v60  ;;  %v4105_v1 = vpop.f32.mrb[4].mxu0  ;;  %4348 = vmatmul.mubr.msk.bf16.gmra.mrb[108].mxu1 %vm1287_vm1, %v4557_v30 }
  0xef   : > { %v1726_v2 = vpop.f32.mrb[5].mxu0  ;;  %v1735_v12 = vadd.f32 %v4105_v1, %v4908_v48  ;;  %4351 = vmatprep.mubr.msk.bf16.mxu1 %vm1287_vm1, %v4558_v34  ;;  %v4543_v34 = vld [vmem:[%s4687_s23 + $0x208] sm:$0xff]  }
  0xf0   : > { %v2990_v5 = vadd.f32 %v2989_v0, %v2735_v63  ;;  %v1727_v6 = vadd.f32 %v4908_v48, %v1726_v2  ;;  %v4106_v7 = vpop.f32.mrb[6].mxu0 }
  0xf1   : > { %v1729_v10 = vpop.f32.mrb[7].mxu0  ;;  %v1738_v17 = vadd.f32 %v4106_v7, %v4908_v48  ;;  %v2739_v19 = vmax.f32 %v1735_v12, 0.0  ;;  %v4960_v51 = vpop.f32.mrb[4].mxu1 }
  0xf2   : > { %v2737_v13 = vmax.f32 %v1727_v6, 0.0  ;;  %v2991_v14 = vadd.f32 %v2990_v5, %v2736_v4  ;;  %v1730_v15 = vadd.f32 %v4908_v48, %v1729_v10  ;;  %v4965_v58 = vpop.f32.mrb[5].mxu1 }
  0xf3   : > { %4212 = vmatmul.mubr.msk.bf16.gmra.mrb[112].mxu0 %vm1287_vm1, %v4527_v3  ;;  %v2740_v25 = vmax.f32 %v1738_v17, 0.0  ;;  %v4967_v60 = vpop.f32.mrb[6].mxu1 }
  0xf4   : > { %v2992_v16 = vadd.f32 %v2991_v14, %v2737_v13  ;;  %v2738_v18 = vmax.f32 %v1730_v15, 0.0  ;;  %4215 = vmatprep.mubr.msk.bf16.mxu0 %vm1287_vm1, %v4530_v8  ;;  %v4971_v1 = vpop.f32.mrb[7].mxu1  ;;  %v4542_v15 = vld [vmem:[%s4687_s23 + $0x200] sm:$0xff]  }
  0xf6   : > { %v2993_v20 = vadd.f32 %v2992_v16, %v2738_v18  ;;  %v4109_v21 = vpop.f32.mrb[8].mxu0  ;;  %4352 = vmatmul.mubr.msk.bf16.gmra.mrb[112].mxu1 %vm1287_vm1, %v4559_v57 }
  0xf7   : > { %v1742_v22 = vpop.f32.mrb[9].mxu0  ;;  %v1751_v35 = vadd.f32 %v4109_v21, %v4908_v48  ;;  %4371 = vmatprep.mubr.msk.bf16.mxu1 %vm4603_vm3, %v4602_v43 }
  0xf8   : > { %v2994_v26 = vadd.f32 %v2993_v20, %v2739_v19  ;;  %v1743_v27 = vadd.f32 %v4908_v48, %v1742_v22  ;;  %v4110_v28 = vpop.f32.mrb[10].mxu0 }
  0xf9   : > { %v1745_v32 = vpop.f32.mrb[11].mxu0  ;;  %v1754_v42 = vadd.f32 %v4110_v28, %v4908_v48  ;;  %v2743_v45 = vmax.f32 %v1751_v35, 0.0  ;;  %v4978_v10 = vpop.f32.mrb[8].mxu1 }
  0xfa   : > { %v2741_v36 = vmax.f32 %v1743_v27, 0.0  ;;  %v2995_v37 = vadd.f32 %v2994_v26, %v2740_v25  ;;  %v1746_v38 = vadd.f32 %v4908_v48, %v1745_v32  ;;  %v4982_v16 = vpop.f32.mrb[9].mxu1 }
  0xfb   : > { %4216 = vmatmul.mubr.msk.bf16.gmra.mrb[116].mxu0 %vm1287_vm1, %v4531_v23  ;;  %v2744_v52 = vmax.f32 %v1754_v42, 0.0  ;;  %v4984_v18 = vpop.f32.mrb[10].mxu1 }
  0xfc   : > { %v2996_v41 = vadd.f32 %v2995_v37, %v2741_v36  ;;  %v2742_v44 = vmax.f32 %v1746_v38, 0.0  ;;  %4219 = vmatprep.mubr.msk.bf16.mxu0 %vm1287_vm1, %v4534_v29  ;;  %v4988_v23 = vpop.f32.mrb[11].mxu1 }
  0xfe   : > { %v2997_v46 = vadd.f32 %v2996_v41, %v2742_v44  ;;  %v4113_v47 = vpop.f32.mrb[12].mxu0  ;;  %v4546_v41 = vld [vmem:[%s4687_s23 + $0x210] sm:$0xff]  }
  0xff   : > { %v1758_v49 = vpop.f32.mrb[13].mxu0  ;;  %v1767_v61 = vadd.f32 %v4113_v47, %v4908_v48 }
 0x100   : > { %v2998_v53 = vadd.f32 %v2997_v46, %v2743_v45  ;;  %v1759_v54 = vadd.f32 %v4908_v48, %v1758_v49  ;;  %v4114_v55 = vpop.f32.mrb[14].mxu0 }
 0x101   : > { %v1761_v59 = vpop.f32.mrb[15].mxu0  ;;  %v1770_v3 = vadd.f32 %v4114_v55, %v4908_v48  ;;  %v2747_v5 = vmax.f32 %v1767_v61, 0.0  ;;  %v4994_v35 = vpop.f32.mrb[12].mxu1 }
 0x102   : > { %v2745_v62 = vmax.f32 %v1759_v54, 0.0  ;;  %v2999_v63 = vadd.f32 %v2998_v53, %v2744_v52  ;;  %v1762_v0 = vadd.f32 %v4908_v48, %v1761_v59  ;;  %v4998_v42 = vpop.f32.mrb[13].mxu1 }
 0x103   : > { %4220 = vmatmul.mubr.msk.bf16.gmra.mrb[120].mxu0 %vm1287_vm1, %v4535_v50  ;;  %v2748_v11 = vmax.f32 %v1770_v3, 0.0  ;;  %v5000_v45 = vpop.f32.mrb[14].mxu1 }
 0x104   : > { %v3000_v2 = vadd.f32 %v2999_v63, %v2745_v62  ;;  %v2746_v4 = vmax.f32 %v1762_v0, 0.0  ;;  %4223 = vmatprep.mubr.msk.bf16.mxu0 %vm1287_vm1, %v4538_v56  ;;  %v5004_v52 = vpop.f32.mrb[15].mxu1  ;;  %v4547_v62 = vld [vmem:[%s4687_s23 + $0x218] sm:$0xff]  }
 0x106   : > { %v3001_v6 = vadd.f32 %v3000_v2, %v2746_v4  ;;  %v4117_v7 = vpop.f32.mrb[16].mxu0 }
 0x107   : > { %v1774_v8 = vpop.f32.mrb[17].mxu0  ;;  %v1783_v19 = vadd.f32 %v4117_v7, %v4908_v48  ;;  %v4562_v7 = vld [vmem:[%s5400_s3 + $0x10] sm:$0xff]  }
 0x108   : > { %v3002_v12 = vadd.f32 %v3001_v6, %v2747_v5  ;;  %v1775_v13 = vadd.f32 %v4908_v48, %v1774_v8  ;;  %v4118_v14 = vpop.f32.mrb[18].mxu0  ;;  %v4550_v5 = vld [vmem:[%s4687_s23 + $0x220] sm:$0xff]   ;;  %4360 = vmatpush3.bf16.msra.mxu1 %v4562_v7 }
 0x109   : > { %v1777_v17 = vpop.f32.mrb[19].mxu0  ;;  %v1786_v26 = vadd.f32 %v4118_v14, %v4908_v48  ;;  %v2751_v28 = vmax.f32 %v1783_v19, 0.0  ;;  %v5010_v63 = vpop.f32.mrb[16].mxu1  ;;  %4361 = vmatprep.subr.bf16.mxu1 %v4602_v43 }
 0x10a   : > { %v2749_v20 = vmax.f32 %v1775_v13, 0.0  ;;  %v3003_v21 = vadd.f32 %v3002_v12, %v2748_v11  ;;  %v1778_v22 = vadd.f32 %v4908_v48, %v1777_v17  ;;  %v5014_v6 = vpop.f32.mrb[17].mxu1 }
 0x10b   : > { %4224 = vmatmul.mubr.msk.bf16.gmra.mrb[124].mxu0 %vm1287_vm1, %v4539_v9  ;;  %v2752_v36 = vmax.f32 %v1786_v26, 0.0  ;;  %v5019_v9 = vpop.f32.mrb[18].mxu1 }
 0x10c   : > { %v3004_v25 = vadd.f32 %v3003_v21, %v2749_v20  ;;  %v2750_v27 = vmax.f32 %v1778_v22, 0.0  ;;  %4227 = vmatprep.mubr.msk.bf16.mxu0 %vm1287_vm1, %v4542_v15  ;;  %v5023_v15 = vpop.f32.mrb[19].mxu1 }
 0x10e   : > { %v3005_v29 = vadd.f32 %v3004_v25, %v2750_v27  ;;  %v4121_v30 = vpop.f32.mrb[20].mxu0  ;;  %v4551_v27 = vld [vmem:[%s4687_s23 + $0x228] sm:$0xff]  }
 0x10f   : > { %v1790_v32 = vpop.f32.mrb[21].mxu0  ;;  %v1799_v46 = vadd.f32 %v4121_v30, %v4908_v48 }
 0x110   : > { %v3006_v37 = vadd.f32 %v3005_v29, %v2751_v28  ;;  %v1791_v38 = vadd.f32 %v4908_v48, %v1790_v32  ;;  %v4122_v40 = vpop.f32.mrb[22].mxu0 }
 0x111   : > { %v1793_v44 = vpop.f32.mrb[23].mxu0  ;;  %v1802_v54 = vadd.f32 %v4122_v40, %v4908_v48  ;;  %v2755_v56 = vmax.f32 %v1799_v46, 0.0  ;;  %v4261_v28 = vpop.f32.mrb[20].mxu1 }
 0x112   : > { %v2753_v47 = vmax.f32 %v1791_v38, 0.0  ;;  %v3007_v49 = vadd.f32 %v3006_v37, %v2752_v36  ;;  %v1794_v50 = vadd.f32 %v4908_v48, %v1793_v44  ;;  %v2350_v36 = vpop.f32.mrb[21].mxu1  ;;  %v2359_v38 = vadd.f32 %v4261_v28, %v4908_v48 }
 0x113   : > { %4228 = vmatmul.mubr.msk.bf16.gmra.mrb[128].mxu0 %vm1287_vm1, %v4543_v34  ;;  %v2756_v0 = vmax.f32 %v1802_v54, 0.0  ;;  %v2351_v40 = vadd.f32 %v4908_v48, %v2350_v36 }
 0x114   : > { %v3008_v53 = vadd.f32 %v3007_v49, %v2753_v47  ;;  %v2754_v55 = vmax.f32 %v1794_v50, 0.0  ;;  %4231 = vmatprep.mubr.msk.bf16.mxu0 %vm1287_vm1, %v4546_v41  ;;  %v4262_v41 = vpop.f32.mrb[22].mxu1 }
 0x115   : > { %v2353_v50 = vpop.f32.mrb[23].mxu1  ;;  %v2362_v54 = vadd.f32 %v4262_v41, %v4908_v48 }
 0x116   : > { %v3009_v57 = vadd.f32 %v3008_v53, %v2754_v55  ;;  %v4125_v59 = vpop.f32.mrb[24].mxu0  ;;  %v2893_v53 = vmax.f32 %v2351_v40, 0.0  ;;  %v2354_v55 = vadd.f32 %v4908_v48, %v2353_v50 }
 0x117   : > { %v1806_v61 = vpop.f32.mrb[25].mxu0  ;;  %v1815_v11 = vadd.f32 %v4125_v59, %v4908_v48 }
 0x118   : > { %v3010_v2 = vadd.f32 %v3009_v57, %v2755_v56  ;;  %v1807_v3 = vadd.f32 %v4908_v48, %v1806_v61  ;;  %v4126_v4 = vpop.f32.mrb[26].mxu0  ;;  %v2895_v61 = vmax.f32 %v2359_v38, 0.0 }
 0x119   : > { %v1809_v8 = vpop.f32.mrb[27].mxu0  ;;  %v1818_v19 = vadd.f32 %v4126_v4, %v4908_v48  ;;  %v2759_v21 = vmax.f32 %v1815_v11, 0.0 }
 0x11a   : > { %v2757_v12 = vmax.f32 %v1807_v3, 0.0  ;;  %v3011_v13 = vadd.f32 %v3010_v2, %v2756_v0  ;;  %v1810_v14 = vadd.f32 %v4908_v48, %v1809_v8  ;;  %v4265_v8 = vpop.f32.mrb[24].mxu1 }
 0x11b   : > { %4232 = vmatmul.mubr.msk.bf16.gmra.mrb[132].mxu0 %vm1287_vm1, %v4547_v62  ;;  %v2760_v29 = vmax.f32 %v1818_v19, 0.0  ;;  %v2894_v62 = vmax.f32 %v2354_v55, 0.0 }
 0x11c   : > { %v3012_v17 = vadd.f32 %v3011_v13, %v2757_v12  ;;  %v2758_v20 = vmax.f32 %v1810_v14, 0.0  ;;  %4235 = vmatprep.mubr.msk.bf16.mxu0 %vm1287_vm1, %v4550_v5  ;;  %v2896_v5 = vmax.f32 %v2362_v54, 0.0 }
 0x11d   : > { %v3174_v7 = vadd.f32 %v2894_v62, %v2893_v53 }
 0x11e   : > { %v3013_v22 = vadd.f32 %v3012_v17, %v2758_v20  ;;  %v4129_v25 = vpop.f32.mrb[28].mxu0  ;;  %v2366_v17 = vpop.f32.mrb[25].mxu1 }
 0x11f   : > { %v1822_v26 = vpop.f32.mrb[29].mxu0  ;;  %v1831_v44 = vadd.f32 %v4129_v25, %v4908_v48  ;;  %v3175_v20 = vadd.f32 %v3174_v7, %v2895_v61 }
 0x120   : > { %v3014_v30 = vadd.f32 %v3013_v22, %v2759_v21  ;;  %v1823_v32 = vadd.f32 %v4908_v48, %v1822_v26  ;;  %v4130_v34 = vpop.f32.mrb[30].mxu0  ;;  %v2367_v21 = vadd.f32 %v4908_v48, %v2366_v17  ;;  %v4266_v22 = vpop.f32.mrb[26].mxu1 }
 0x121   : > { %v1825_v37 = vpop.f32.mrb[31].mxu0  ;;  %v1834_v57 = vadd.f32 %v4130_v34, %v4908_v48  ;;  %v2763_v0 = vmax.f32 %v1831_v44, 0.0  ;;  %v2369_v28 = vpop.f32.mrb[27].mxu1  ;;  %v2378_v41 = vadd.f32 %v4266_v22, %v4908_v48 }
 0x122   : > { %v2761_v46 = vmax.f32 %v1823_v32, 0.0  ;;  %v3015_v47 = vadd.f32 %v3014_v30, %v2760_v29  ;;  %v1826_v49 = vadd.f32 %v4908_v48, %v1825_v37  ;;  %v2375_v29 = vadd.f32 %v4265_v8, %v4908_v48  ;;  %v4269_v54 = vpop.f32.mrb[28].mxu1 }
 0x123   : > { %4236 = vmatmul.mubr.msk.bf16.gmra.mrb[136].mxu0 %vm1287_vm1, %v4551_v27  ;;  %v2764_v11 = vmax.f32 %v1834_v57, 0.0  ;;  %v2897_v30 = vmax.f32 %v2367_v21, 0.0  ;;  %v3176_v32 = vadd.f32 %v3175_v20, %v2896_v5  ;;  %v2370_v38 = vadd.f32 %v4908_v48, %v2369_v28  ;;  %v2382_v62 = vpop.f32.mrb[29].mxu1 }
 0x124   : > { %v3016_v56 = vadd.f32 %v3015_v47, %v2761_v46  ;;  %v2762_v59 = vmax.f32 %v1826_v49, 0.0  ;;  %v2899_v53 = vmax.f32 %v2375_v29, 0.0 }
 0x125   : > { %v3177_v40 = vadd.f32 %v3176_v32, %v2897_v30  ;;  %v2898_v49 = vmax.f32 %v2370_v38, 0.0 }
 0x126   : > { %v3017_v2 = vadd.f32 %v3016_v56, %v2762_v59  ;;  %v4133_v3 = vpop.f32.mrb[32].mxu0 }
 0x127   : > { %v1838_v4 = vpop.f32.mrb[33].mxu0  ;;  %v1847_v26 = vadd.f32 %v4133_v3, %v4908_v48  ;;  %v3178_v61 = vadd.f32 %v3177_v40, %v2898_v49  ;;  %v2383_v3 = vadd.f32 %v4908_v48, %v2382_v62 }
 0x128   : > { %v3018_v12 = vadd.f32 %v3017_v2, %v2763_v0  ;;  %v1839_v13 = vadd.f32 %v4908_v48, %v1838_v4  ;;  %v4134_v14 = vpop.f32.mrb[34].mxu0  ;;  %v2900_v2 = vmax.f32 %v2378_v41, 0.0  ;;  %v4270_v4 = vpop.f32.mrb[30].mxu1 }
 0x129   : > { %v1841_v19 = vpop.f32.mrb[35].mxu0  ;;  %v1850_v36 = vadd.f32 %v4134_v14, %v4908_v48  ;;  %v2767_v44 = vmax.f32 %v1847_v26, 0.0  ;;  %v2391_v14 = vadd.f32 %v4269_v54, %v4908_v48  ;;  %v2901_v17 = vmax.f32 %v2383_v3, 0.0 }
 0x12a   : > { %v5041_v25 = vadd.f32 %v3018_v12, %v2764_v11  ;;  %v1842_v27 = vadd.f32 %v4908_v48, %v1841_v19  ;;  %v2765_v34 = vmax.f32 %v1839_v13, 0.0  ;;  %v2385_v12 = vpop.f32.mrb[31].mxu1  ;;  %v3179_v13 = vadd.f32 %v3178_v61, %v2899_v53 }
 0x12b   : > { %v2768_v55 = vmax.f32 %v1850_v36, 0.0  ;;  %v2394_v26 = vadd.f32 %v4270_v4, %v4908_v48  ;;  %v4273_v38 = vpop.f32.mrb[32].mxu1 }
 0x12c   : > { %v2766_v37 = vmax.f32 %v1842_v27, 0.0  ;;  %v3180_v22 = vadd.f32 %v3179_v13, %v2900_v2  ;;  %v2386_v27 = vadd.f32 %v4908_v48, %v2385_v12  ;;  %v2407_v3 = vadd.f32 %v4273_v38, %v4908_v48 }
 0x12e   : > { %v3026_v46 = vadd.f32 %v2766_v37, %v2765_v34  ;;  %v4137_v47 = vpop.f32.mrb[36].mxu0  ;;  %v2903_v34 = vmax.f32 %v2391_v14, 0.0  ;;  %v3181_v36 = vadd.f32 %v3180_v22, %v2901_v17  ;;  %v2902_v37 = vmax.f32 %v2386_v27, 0.0 }
 0x12f   : > { %v1854_v50 = vpop.f32.mrb[37].mxu0  ;;  %v1863_v5 = vadd.f32 %v4137_v47, %v4908_v48  ;;  %v2398_v47 = vpop.f32.mrb[33].mxu1  ;;  %v2907_v22 = vmax.f32 %v2407_v3, 0.0 }
 0x130   : > { %v3027_v56 = vadd.f32 %v3026_v46, %v2767_v44  ;;  %v1855_v57 = vadd.f32 %v4908_v48, %v1854_v50  ;;  %v4138_v59 = vpop.f32.mrb[38].mxu0  ;;  %v2904_v50 = vmax.f32 %v2394_v26, 0.0  ;;  %v3182_v53 = vadd.f32 %v3181_v36, %v2902_v37 }
 0x131   : > { %v1857_v0 = vpop.f32.mrb[39].mxu0  ;;  %v1866_v20 = vadd.f32 %v4138_v59, %v4908_v48  ;;  %v2771_v28 = vmax.f32 %v1863_v5, 0.0  ;;  %v2399_v54 = vadd.f32 %v4908_v48, %v2398_v47 }
 0x132   : > { %v2769_v7 = vmax.f32 %v1855_v57, 0.0  ;;  %v3028_v8 = vadd.f32 %v3027_v56, %v2768_v55  ;;  %v1858_v11 = vadd.f32 %v4908_v48, %v1857_v0  ;;  %v4274_v55 = vpop.f32.mrb[34].mxu1  ;;  %v4563_v0 = vld [vmem:[%s5400_s3 + $0x18] sm:$0xff]   ;;  %v3183_v2 = vadd.f32 %v3182_v53, %v2903_v34 }
 0x133   : > { %v2772_v40 = vmax.f32 %v1866_v20, 0.0  ;;  %v2401_v62 = vpop.f32.mrb[35].mxu1  ;;  %v2905_v4 = vmax.f32 %v2399_v54, 0.0  ;;  %4362 = vmatpush3.bf16.msra.mxu1 %v4563_v0  ;;  %v2410_v13 = vadd.f32 %v4274_v55, %v4908_v48 }
 0x134   : > { %v3029_v19 = vadd.f32 %v3028_v8, %v2769_v7  ;;  %v2770_v21 = vmax.f32 %v1858_v11, 0.0  ;;  %v2402_v11 = vadd.f32 %v4908_v48, %v2401_v62  ;;  %v3184_v12 = vadd.f32 %v3183_v2, %v2904_v50  ;;  %4363 = vmatprep.subr.bf16.mxu1 %v4602_v43  ;;  %v4277_v27 = vpop.f32.mrb[36].mxu1 }
 0x135   : > { %v2414_v34 = vpop.f32.mrb[37].mxu1  ;;  %v2908_v37 = vmax.f32 %v2410_v13, 0.0  ;;  %v2423_v54 = vadd.f32 %v4277_v27, %v4908_v48 }
 0x136   : > { %v3030_v29 = vadd.f32 %v3029_v19, %v2770_v21  ;;  %v4141_v30 = vpop.f32.mrb[40].mxu0  ;;  %v2906_v20 = vmax.f32 %v2402_v11, 0.0  ;;  %v3185_v26 = vadd.f32 %v3184_v12, %v2905_v4 }
 0x137   : > { %v1870_v32 = vpop.f32.mrb[41].mxu0  ;;  %v1879_v56 = vadd.f32 %v4141_v30, %v4908_v48 }
 0x138   : > { %v3031_v41 = vadd.f32 %v3030_v29, %v2771_v28  ;;  %v1871_v44 = vadd.f32 %v4908_v48, %v1870_v32  ;;  %v4142_v46 = vpop.f32.mrb[42].mxu0  ;;  %v3186_v38 = vadd.f32 %v3185_v26, %v2906_v20 }
 0x139   : > { %v1873_v49 = vpop.f32.mrb[43].mxu0  ;;  %v1882_v7 = vadd.f32 %v4142_v46, %v4908_v48  ;;  %v2775_v14 = vmax.f32 %v1879_v56, 0.0 }
 0x13a   : > { %v2773_v57 = vmax.f32 %v1871_v44, 0.0  ;;  %v3032_v59 = vadd.f32 %v3031_v41, %v2772_v40  ;;  %v1874_v61 = vadd.f32 %v4908_v48, %v1873_v49  ;;  %v2415_v40 = vadd.f32 %v4908_v48, %v2414_v34  ;;  %v4278_v41 = vpop.f32.mrb[38].mxu1 }
 0x13b   : > { %v2776_v28 = vmax.f32 %v1882_v7, 0.0  ;;  %v2417_v50 = vpop.f32.mrb[39].mxu1  ;;  %v3187_v53 = vadd.f32 %v3186_v38, %v2907_v22  ;;  %v2426_v0 = vadd.f32 %v4278_v41, %v4908_v48 }
 0x13c   : > { %v3033_v5 = vadd.f32 %v3032_v59, %v2773_v57  ;;  %v2774_v8 = vmax.f32 %v1874_v61, 0.0  ;;  %v2909_v55 = vmax.f32 %v2415_v40, 0.0  ;;  %v2418_v61 = vadd.f32 %v4908_v48, %v2417_v50  ;;  %v4281_v12 = vpop.f32.mrb[40].mxu1 }
 0x13d   : > { %v3188_v62 = vadd.f32 %v3187_v53, %v2908_v37  ;;  %v2430_v20 = vpop.f32.mrb[41].mxu1  ;;  %v2912_v22 = vmax.f32 %v2426_v0, 0.0  ;;  %v2439_v38 = vadd.f32 %v4281_v12, %v4908_v48 }
 0x13e   : > { %v3034_v17 = vadd.f32 %v3033_v5, %v2774_v8  ;;  %v4145_v19 = vpop.f32.mrb[44].mxu0  ;;  %v2910_v5 = vmax.f32 %v2418_v61, 0.0  ;;  %v2911_v8 = vmax.f32 %v2423_v54, 0.0  ;;  %v2431_v27 = vadd.f32 %v4908_v48, %v2430_v20 }
 0x13f   : > { %v1886_v21 = vpop.f32.mrb[45].mxu0  ;;  %v1895_v44 = vadd.f32 %v4145_v19, %v4908_v48  ;;  %v3189_v11 = vadd.f32 %v3188_v62, %v2909_v55 }
 0x140   : > { %v3035_v29 = vadd.f32 %v3034_v17, %v2775_v14  ;;  %v1887_v30 = vadd.f32 %v4908_v48, %v1886_v21  ;;  %v4146_v32 = vpop.f32.mrb[46].mxu0  ;;  %v2913_v40 = vmax.f32 %v2431_v27, 0.0 }
 0x141   : > { %v1889_v36 = vpop.f32.mrb[47].mxu0  ;;  %v1898_v57 = vadd.f32 %v4146_v32, %v4908_v48  ;;  %v2779_v2 = vmax.f32 %v1895_v44, 0.0  ;;  %v3190_v26 = vadd.f32 %v3189_v11, %v2910_v5 }
 0x142   : > { %v2777_v46 = vmax.f32 %v1887_v30, 0.0  ;;  %v3036_v47 = vadd.f32 %v3035_v29, %v2776_v28  ;;  %v1890_v49 = vadd.f32 %v4908_v48, %v1889_v36  ;;  %v4282_v28 = vpop.f32.mrb[42].mxu1 }
 0x143   : > { %v2780_v13 = vmax.f32 %v1898_v57, 0.0  ;;  %v2433_v36 = vpop.f32.mrb[43].mxu1  ;;  %v3191_v37 = vadd.f32 %v3190_v26, %v2911_v8  ;;  %v2442_v50 = vadd.f32 %v4282_v28, %v4908_v48 }
 0x144   : > { %v3037_v56 = vadd.f32 %v3036_v47, %v2777_v46  ;;  %v2778_v59 = vmax.f32 %v1890_v49, 0.0  ;;  %v2434_v47 = vadd.f32 %v4908_v48, %v2433_v36  ;;  %v4285_v62 = vpop.f32.mrb[44].mxu1 }
 0x145   : > { %v3192_v49 = vadd.f32 %v3191_v37, %v2912_v22  ;;  %v2446_v5 = vpop.f32.mrb[45].mxu1  ;;  %v2916_v11 = vmax.f32 %v2442_v50, 0.0  ;;  %v2455_v27 = vadd.f32 %v4285_v62, %v4908_v48 }
 0x146   : > { %v3038_v3 = vadd.f32 %v3037_v56, %v2778_v59  ;;  %v4149_v4 = vpop.f32.mrb[48].mxu0  ;;  %v2914_v56 = vmax.f32 %v2434_v47, 0.0  ;;  %v2915_v59 = vmax.f32 %v2439_v38, 0.0 }
 0x147   : > { %v1902_v7 = vpop.f32.mrb[49].mxu0  ;;  %v1911_v29 = vadd.f32 %v4149_v4, %v4908_v48  ;;  %v3193_v61 = vadd.f32 %v3192_v49, %v2913_v40  ;;  %v2919_v47 = vmax.f32 %v2455_v27, 0.0 }
 0x148   : > { %v3039_v14 = vadd.f32 %v3038_v3, %v2779_v2  ;;  %v1903_v17 = vadd.f32 %v4908_v48, %v1902_v7  ;;  %v4150_v19 = vpop.f32.mrb[50].mxu0  ;;  %v4564_v7 = vld [vmem:[%s5400_s3 + $0x20] sm:$0xff]  }
 0x149   : > { %v1905_v21 = vpop.f32.mrb[51].mxu0  ;;  %v1914_v44 = vadd.f32 %v4150_v19, %v4908_v48  ;;  %v2783_v53 = vmax.f32 %v1911_v29, 0.0  ;;  %v3194_v12 = vadd.f32 %v3193_v61, %v2914_v56  ;;  %4364 = vmatpush3.bf16.msra.mxu1 %v4564_v7 }
 0x14a   : > { %v2781_v30 = vmax.f32 %v1903_v17, 0.0  ;;  %v3040_v32 = vadd.f32 %v3039_v14, %v2780_v13  ;;  %v1906_v34 = vadd.f32 %v4908_v48, %v1905_v21  ;;  %v2447_v13 = vadd.f32 %v4908_v48, %v2446_v5  ;;  %v4286_v14 = vpop.f32.mrb[46].mxu1  ;;  %4365 = vmatprep.subr.bf16.mxu1 %v4602_v43 }
 0x14b   : > { %v2784_v0 = vmax.f32 %v1914_v44, 0.0  ;;  %v2449_v22 = vpop.f32.mrb[47].mxu1  ;;  %v3195_v26 = vadd.f32 %v3194_v12, %v2915_v59  ;;  %v2458_v37 = vadd.f32 %v4286_v14, %v4908_v48 }
 0x14c   : > { %v3041_v41 = vadd.f32 %v3040_v32, %v2781_v30  ;;  %v2782_v46 = vmax.f32 %v1906_v34, 0.0  ;;  %v2917_v28 = vmax.f32 %v2447_v13, 0.0  ;;  %v2450_v34 = vadd.f32 %v4908_v48, %v2449_v22  ;;  %v4289_v50 = vpop.f32.mrb[48].mxu1 }
 0x14d   : > { %v3196_v36 = vadd.f32 %v3195_v26, %v2916_v11  ;;  %v2920_v61 = vmax.f32 %v2458_v37, 0.0  ;;  %v2471_v12 = vadd.f32 %v4289_v50, %v4908_v48 }
 0x14e   : > { %v3042_v54 = vadd.f32 %v3041_v41, %v2782_v46  ;;  %v4153_v55 = vpop.f32.mrb[52].mxu0  ;;  %v2918_v44 = vmax.f32 %v2450_v34, 0.0 }
 0x14f   : > { %v1918_v57 = vpop.f32.mrb[53].mxu0  ;;  %v1927_v17 = vadd.f32 %v4153_v55, %v4908_v48  ;;  %v3197_v49 = vadd.f32 %v3196_v36, %v2917_v28  ;;  %v2923_v34 = vmax.f32 %v2471_v12, 0.0 }
 0x150   : > { %v3043_v2 = vadd.f32 %v3042_v54, %v2783_v53  ;;  %v1919_v3 = vadd.f32 %v4908_v48, %v1918_v57  ;;  %v4154_v4 = vpop.f32.mrb[54].mxu0  ;;  %v2462_v57 = vpop.f32.mrb[49].mxu1 }
 0x151   : > { %v1921_v8 = vpop.f32.mrb[55].mxu0  ;;  %v1930_v30 = vadd.f32 %v4154_v4, %v4908_v48  ;;  %v2787_v38 = vmax.f32 %v1927_v17, 0.0  ;;  %v3198_v62 = vadd.f32 %v3197_v49, %v2918_v44 }
 0x152   : > { %v2785_v19 = vmax.f32 %v1919_v3, 0.0  ;;  %v3044_v20 = vadd.f32 %v3043_v2, %v2784_v0  ;;  %v1922_v21 = vadd.f32 %v4908_v48, %v1921_v8  ;;  %v2463_v0 = vadd.f32 %v4908_v48, %v2462_v57  ;;  %v4290_v2 = vpop.f32.mrb[50].mxu1 }
 0x153   : > { %v2788_v53 = vmax.f32 %v1930_v30, 0.0  ;;  %v2465_v8 = vpop.f32.mrb[51].mxu1  ;;  %v3199_v11 = vadd.f32 %v3198_v62, %v2919_v47  ;;  %v2474_v22 = vadd.f32 %v4290_v2, %v4908_v48  ;;  %v3020_v30 = vrot.slane %v5041_v25, 4 }
 0x154   : > { %v3045_v29 = vadd.f32 %v3044_v20, %v2785_v19  ;;  %v2786_v32 = vmax.f32 %v1922_v21, 0.0  ;;  %v2921_v13 = vmax.f32 %v2463_v0, 0.0  ;;  %v2466_v20 = vadd.f32 %v4908_v48, %v2465_v8  ;;  %v4293_v37 = vpop.f32.mrb[52].mxu1 }
 0x155   : > { %v3200_v21 = vadd.f32 %v3199_v11, %v2920_v61  ;;  %v2924_v50 = vmax.f32 %v2474_v22, 0.0  ;;  %v2487_v61 = vadd.f32 %v4293_v37, %v4908_v48  ;;  %v3021_v0 = vadd.f32 %v3020_v30, %v5041_v25 }
 0x156   : > { %v3046_v40 = vadd.f32 %v3045_v29, %v2786_v32  ;;  %v4157_v41 = vpop.f32.mrb[56].mxu0  ;;  %v2922_v29 = vmax.f32 %v2466_v20, 0.0 }
 0x157   : > { %v1934_v46 = vpop.f32.mrb[57].mxu0  ;;  %v1943_v3 = vadd.f32 %v4157_v41, %v4908_v48  ;;  %v3201_v36 = vadd.f32 %v3200_v21, %v2921_v13  ;;  %v3022_v21 = vrot.slane %v3021_v0, 2 }
 0x158   : > { %v3047_v54 = vadd.f32 %v3046_v40, %v2787_v38  ;;  %v1935_v55 = vadd.f32 %v4908_v48, %v1934_v46  ;;  %v4158_v56 = vpop.f32.mrb[58].mxu0  ;;  %v2478_v46 = vpop.f32.mrb[53].mxu1 }
 0x159   : > { %v1937_v59 = vpop.f32.mrb[59].mxu0  ;;  %v1946_v17 = vadd.f32 %v4158_v56, %v4908_v48  ;;  %v2791_v26 = vmax.f32 %v1943_v3, 0.0 }
 0x15a   : > { %v2789_v4 = vmax.f32 %v1935_v55, 0.0  ;;  %v3048_v5 = vadd.f32 %v3047_v54, %v2788_v53  ;;  %v1938_v7 = vadd.f32 %v4908_v48, %v1937_v59  ;;  %v3202_v53 = vadd.f32 %v3201_v36, %v2922_v29  ;;  %v4294_v55 = vpop.f32.mrb[54].mxu1 }
 0x15b   : > { %v2792_v38 = vmax.f32 %v1946_v17, 0.0  ;;  %v2479_v54 = vadd.f32 %v4908_v48, %v2478_v46  ;;  %v2481_v62 = vpop.f32.mrb[55].mxu1  ;;  %v2490_v8 = vadd.f32 %v4294_v55, %v4908_v48 }
 0x15c   : > { %v3049_v14 = vadd.f32 %v3048_v5, %v2789_v4  ;;  %v2790_v19 = vmax.f32 %v1938_v7, 0.0  ;;  %v3203_v3 = vadd.f32 %v3202_v53, %v2923_v34  ;;  %v2482_v11 = vadd.f32 %v4908_v48, %v2481_v62 }
 0x15d   : > { %v2925_v4 = vmax.f32 %v2479_v54, 0.0  ;;  %v2928_v30 = vmax.f32 %v2490_v8, 0.0 }
 0x15e   : > { %v3050_v27 = vadd.f32 %v3049_v14, %v2790_v19  ;;  %v4161_v28 = vpop.f32.mrb[60].mxu0  ;;  %v5115_v12 = vadd.f32 %v3203_v3, %v2924_v50  ;;  %v2927_v19 = vmax.f32 %v2487_v61, 0.0  ;;  %v2926_v20 = vmax.f32 %v2482_v11, 0.0 }
 0x15f   : > { %v1950_v32 = vpop.f32.mrb[61].mxu0  ;;  %v1959_v47 = vadd.f32 %v4161_v28, %v4908_v48 }
 0x160   : > { %v3051_v40 = vadd.f32 %v3050_v27, %v2791_v26  ;;  %v1951_v41 = vadd.f32 %v4908_v48, %v1950_v32  ;;  %v4162_v44 = vpop.f32.mrb[62].mxu0  ;;  %v4297_v26 = vpop.f32.mrb[56].mxu1  ;;  %v3211_v32 = vadd.f32 %v2926_v20, %v2925_v4 }
 0x161   : > { %v1953_v49 = vpop.f32.mrb[63].mxu0  ;;  %v1962_v2 = vadd.f32 %v4162_v44, %v4908_v48  ;;  %v2795_v13 = vmax.f32 %v1959_v47, 0.0  ;;  %v2494_v34 = vpop.f32.mrb[57].mxu1  ;;  %v2503_v53 = vadd.f32 %v4297_v26, %v4908_v48  ;;  %v5129_v26 = vld [vmem:[%s5399_s2] ss:$0 sm:$0xff] }
 0x162   : > { %v2793_v56 = vmax.f32 %v1951_v41, 0.0  ;;  %v3052_v57 = vadd.f32 %v3051_v40, %v2792_v38  ;;  %v1954_v59 = vadd.f32 %v4908_v48, %v1953_v49  ;;  %v2495_v37 = vadd.f32 %v4908_v48, %v2494_v34  ;;  %v4298_v38 = vpop.f32.mrb[58].mxu1 }
 0x163   : > { %v2796_v22 = vmax.f32 %v1962_v2, 0.0  ;;  %v3212_v46 = vadd.f32 %v3211_v32, %v2927_v19  ;;  %v2497_v47 = vpop.f32.mrb[59].mxu1  ;;  %v3023_v49 = vadd.f32 %v3022_v21, %v3021_v0  ;;  %v2506_v61 = vadd.f32 %v4298_v38, %v4908_v48 }
 0x164   : > { %v3053_v5 = vadd.f32 %v3052_v57, %v2793_v56  ;;  %v2794_v7 = vmax.f32 %v1954_v59, 0.0  ;;  %v2929_v54 = vmax.f32 %v2495_v37, 0.0  ;;  %v2498_v62 = vadd.f32 %v4908_v48, %v2497_v47 }
 0x165   : > { %v3213_v59 = vadd.f32 %v3212_v46, %v2928_v30  ;;  %v3024_v8 = vrot.slane %v3023_v49, 1  ;;  %v2931_v11 = vmax.f32 %v2503_v53, 0.0 }
 0x166   : > { %v3054_v14 = vadd.f32 %v3053_v5, %v2794_v7  ;;  %v4165_v17 = vpop.f32.mrb[64].mxu0 }
 0x167   : > { %v1966_v25 = vpop.f32.mrb[65].mxu0  ;;  %v1975_v41 = vadd.f32 %v4165_v17, %v4908_v48  ;;  %v3214_v7 = vadd.f32 %v3213_v59, %v2929_v54 }
 0x168   : > { %v3055_v27 = vadd.f32 %v3054_v14, %v2795_v13  ;;  %v1967_v28 = vadd.f32 %v4908_v48, %v1966_v25  ;;  %v4166_v29 = vpop.f32.mrb[66].mxu0  ;;  %v2930_v13 = vmax.f32 %v2498_v62, 0.0  ;;  %v4301_v14 = vpop.f32.mrb[60].mxu1 }
 0x169   : > { %v1969_v36 = vpop.f32.mrb[67].mxu0  ;;  %v1978_v50 = vadd.f32 %v4166_v29, %v4908_v48  ;;  %v2799_v3 = vmax.f32 %v1975_v41, 0.0  ;;  %v2510_v25 = vpop.f32.mrb[61].mxu1  ;;  %v2932_v29 = vmax.f32 %v2506_v61, 0.0  ;;  %v2519_v54 = vadd.f32 %v5129_v26, %v4301_v14 }
 0x16a   : > { %v3056_v40 = vadd.f32 %v3055_v27, %v2796_v22  ;;  %v1970_v44 = vadd.f32 %v4908_v48, %v1969_v36  ;;  %v2797_v56 = vmax.f32 %v1967_v28, 0.0  ;;  %v3215_v30 = vadd.f32 %v3214_v7, %v2930_v13  ;;  %v4302_v32 = vpop.f32.mrb[62].mxu1 }
 0x16b   : > { %v2800_v19 = vmax.f32 %v1978_v50, 0.0  ;;  %v2511_v53 = vadd.f32 %v5129_v26, %v2510_v25 }
 0x16c   : > { %v3057_v55 = vrot.slane %v3056_v40, 4  ;;  %v2798_v57 = vmax.f32 %v1970_v44, 0.0  ;;  %v3216_v44 = vadd.f32 %v3215_v30, %v2931_v11 }
 0x16e   : > { %v3058_v2 = vadd.f32 %v3057_v55, %v3056_v40  ;;  %v3063_v4 = vadd.f32 %v2798_v57, %v2797_v56  ;;  %v4169_v5 = vpop.f32.mrb[68].mxu0  ;;  %v2513_v40 = vpop.f32.mrb[63].mxu1  ;;  %v3217_v55 = vadd.f32 %v3216_v44, %v2932_v29 }
 0x16f   : > { %v1982_v0 = vpop.f32.mrb[69].mxu0  ;;  %v1991_v27 = vadd.f32 %v5129_v26, %v4169_v5  ;;  %v2514_v56 = vadd.f32 %v5129_v26, %v2513_v40  ;;  %v2522_v5 = vadd.f32 %v5129_v26, %v4302_v32 }
 0x170   : > { %v3059_v17 = vrot.slane %v3058_v2, 2  ;;  %v3064_v20 = vadd.f32 %v3063_v4, %v2799_v3  ;;  %v1983_v21 = vadd.f32 %v4908_v48, %v1982_v0  ;;  %v4170_v22 = vpop.f32.mrb[70].mxu0  ;;  %v3025_v48 = vadd.f32 %v3024_v8, %v3023_v49  ;;  %v4305_v8 = vpop.f32.mrb[64].mxu1 }
 0x171   : > { %v1985_v28 = vpop.f32.mrb[71].mxu0  ;;  %v1994_v41 = vadd.f32 %v5129_v26, %v4170_v22  ;;  %v2803_v59 = vmax.f32 %v1991_v27, 0.0  ;;  %v2934_v7 = vmax.f32 %v2514_v56, 0.0  ;;  %v2935_v22 = vmax.f32 %v2519_v54, 0.0 }
 0x172   : > { %v3060_v34 = vadd.f32 %v3059_v17, %v3058_v2  ;;  %v2801_v36 = vmax.f32 %v1983_v21, 0.0  ;;  %v3065_v37 = vadd.f32 %v3064_v20, %v2800_v19  ;;  %v1986_v38 = vadd.f32 %v5129_v26, %v1985_v28  ;;  %v2526_v19 = vpop.f32.mrb[65].mxu1 }
 0x173   : > { %v2933_v2 = vmax.f32 %v2511_v53, 0.0  ;;  %v3286_v49 = vmul.f32 0.00390625, %v3025_v48  ;;  %v2804_v3 = vmax.f32 %v1994_v41, 0.0  ;;  %v2527_v25 = vadd.f32 %v5129_v26, %v2526_v19  ;;  %v4306_v27 = vpop.f32.mrb[66].mxu1 }
 0x174   : > { %v3061_v46 = vrot.slane %v3060_v34, 1  ;;  %v3066_v47 = vadd.f32 %v3065_v37, %v2801_v36  ;;  %v2802_v50 = vmax.f32 %v1986_v38, 0.0  ;;  %v4565_v36 = vld [vmem:[%s5400_s3 + $0x28] sm:$0xff]   ;;  %v2936_v37 = vmax.f32 %v2522_v5, 0.0 }
 0x175   : > { %v3218_v17 = vadd.f32 %v3217_v55, %v2933_v2  ;;  %4366 = vmatpush3.bf16.msra.mxu1 %v4565_v36 }
 0x176   : > { %v3062_v57 = vadd.f32 %v3061_v46, %v3060_v34  ;;  %v3067_v61 = vadd.f32 %v3066_v47, %v2802_v50  ;;  %v4173_v62 = vpop.f32.mrb[72].mxu0  ;;  %v2529_v34 = vpop.f32.mrb[67].mxu1  ;;  %v2535_v47 = vadd.f32 %v5129_v26, %v4305_v8  ;;  %v2937_v50 = vmax.f32 %v2527_v25, 0.0  ;;  %4367 = vmatprep.subr.bf16.mxu1 %v4602_v43 }
 0x177   : > { %v1998_v4 = vpop.f32.mrb[73].mxu0  ;;  %v2007_v20 = vadd.f32 %v5129_v26, %v4173_v62  ;;  %v3219_v38 = vadd.f32 %v3218_v17, %v2934_v7  ;;  %v2530_v44 = vadd.f32 %v5129_v26, %v2529_v34  ;;  %v4309_v62 = vpop.f32.mrb[68].mxu1 }
 0x178   : > { %v3287_v0 = vmul.f32 0.00390625, %v3062_v57  ;;  %v3068_v11 = vadd.f32 %v3067_v61, %v2803_v59  ;;  %v1999_v13 = vadd.f32 %v5129_v26, %v1998_v4  ;;  %v4174_v14 = vpop.f32.mrb[74].mxu0  ;;  %v2538_v59 = vadd.f32 %v5129_v26, %v4306_v27  ;;  %v2542_v5 = vpop.f32.mrb[69].mxu1 }
 0x179   : > { %v2001_v21 = vpop.f32.mrb[75].mxu0  ;;  %v2010_v48 = vadd.f32 %v5129_v26, %v4174_v14  ;;  %v3220_v46 = vadd.f32 %v3219_v38, %v2935_v22  ;;  %v2807_v53 = vmax.f32 %v2007_v20, 0.0  ;;  %v2938_v61 = vmax.f32 %v2530_v44, 0.0 }
 0x17a   : > { %v5142_v28 = vsel %vm3303_vm2, %v3287_v0, %v3286_v49  ;;  %v2805_v29 = vmax.f32 %v1999_v13, 0.0  ;;  %v3069_v30 = vadd.f32 %v3068_v11, %v2804_v3  ;;  %v2002_v32 = vadd.f32 %v5129_v26, %v2001_v21  ;;  %v4310_v13 = vpop.f32.mrb[70].mxu1 }
 0x17b   : > { %v3221_v57 = vadd.f32 %v3220_v46, %v2936_v37  ;;  %v2808_v2 = vmax.f32 %v2010_v48, 0.0  ;;  %v2939_v8 = vmax.f32 %v2535_v47, 0.0  ;;  %v2543_v11 = vadd.f32 %v5129_v26, %v2542_v5  ;;  %v2545_v21 = vpop.f32.mrb[71].mxu1 }
 0x17c   : > { %v3070_v40 = vadd.f32 %v3069_v30, %v2805_v29  ;;  %v2806_v41 = vmax.f32 %v2002_v32, 0.0  ;;  %v2940_v22 = vmax.f32 %v2538_v59, 0.0  ;;  %v2546_v32 = vadd.f32 %v5129_v26, %v2545_v21 }
 0x17d   : > { %v3222_v0 = vadd.f32 %v3221_v57, %v2937_v50  ;;  %v2551_v36 = vadd.f32 %v5129_v26, %v4309_v62  ;;  %v2941_v37 = vmax.f32 %v2543_v11, 0.0  ;;  %v2554_v46 = vadd.f32 %v5129_v26, %v4310_v13  ;;  %v4313_v50 = vpop.f32.mrb[72].mxu1 }
 0x17e   : > { %v3071_v54 = vadd.f32 %v3070_v40, %v2806_v41  ;;  %v4177_v55 = vpop.f32.mrb[76].mxu0  ;;  %v2942_v47 = vmax.f32 %v2546_v32, 0.0  ;;  %v2558_v57 = vpop.f32.mrb[73].mxu1  ;;  %v2567_v21 = vadd.f32 %v5129_v26, %v4313_v50 }
 0x17f   : > { %v2014_v56 = vpop.f32.mrb[77].mxu0  ;;  %v2023_v14 = vadd.f32 %v5129_v26, %v4177_v55  ;;  %v3223_v25 = vadd.f32 %v3222_v0, %v2938_v61  ;;  %v2943_v61 = vmax.f32 %v2551_v36, 0.0  ;;  %v2559_v62 = vadd.f32 %v5129_v26, %v2558_v57 }
 0x180   : > { %v3072_v49 = vadd.f32 %v3071_v54, %v2807_v53  ;;  %v2015_v3 = vadd.f32 %v5129_v26, %v2014_v56  ;;  %v4178_v4 = vpop.f32.mrb[78].mxu0  ;;  %v2944_v0 = vmax.f32 %v2554_v46, 0.0 }
 0x181   : > { %v2017_v7 = vpop.f32.mrb[79].mxu0  ;;  %v2026_v29 = vadd.f32 %v5129_v26, %v4178_v4  ;;  %v3224_v34 = vadd.f32 %v3223_v25, %v2939_v8  ;;  %v2811_v38 = vmax.f32 %v2023_v14, 0.0 }
 0x182   : > { %v2809_v17 = vmax.f32 %v2015_v3, 0.0  ;;  %v3073_v19 = vadd.f32 %v3072_v49, %v2808_v2  ;;  %v2018_v20 = vadd.f32 %v5129_v26, %v2017_v7  ;;  %v4314_v49 = vpop.f32.mrb[74].mxu1 }
 0x183   : > { %v3225_v44 = vadd.f32 %v3224_v34, %v2940_v22  ;;  %v2812_v53 = vmax.f32 %v2026_v29, 0.0  ;;  %v2561_v8 = vpop.f32.mrb[75].mxu1  ;;  %v2945_v22 = vmax.f32 %v2559_v62, 0.0  ;;  %v2570_v34 = vadd.f32 %v5129_v26, %v4314_v49 }
 0x184   : > { %v3074_v27 = vadd.f32 %v3073_v19, %v2809_v17  ;;  %v2810_v30 = vmax.f32 %v2018_v20, 0.0  ;;  %v2562_v19 = vadd.f32 %v5129_v26, %v2561_v8 }
 0x185   : > { %v3226_v2 = vadd.f32 %v3225_v44, %v2941_v37  ;;  %v4317_v37 = vpop.f32.mrb[76].mxu1 }
 0x186   : > { %v3075_v40 = vadd.f32 %v3074_v27, %v2810_v30  ;;  %v4181_v48 = vpop.f32.mrb[80].mxu0  ;;  %v2946_v36 = vmax.f32 %v2562_v19, 0.0  ;;  %v2574_v44 = vpop.f32.mrb[77].mxu1  ;;  %v2583_v8 = vadd.f32 %v5129_v26, %v4317_v37 }
 0x187   : > { %v2030_v41 = vpop.f32.mrb[81].mxu0  ;;  %v2039_v3 = vadd.f32 %v5129_v26, %v4181_v48  ;;  %v3227_v11 = vadd.f32 %v3226_v2, %v2942_v47  ;;  %v2947_v47 = vmax.f32 %v2567_v21, 0.0  ;;  %v2575_v50 = vadd.f32 %v5129_v26, %v2574_v44 }
 0x188   : > { %v3076_v54 = vadd.f32 %v3075_v40, %v2811_v38  ;;  %v2031_v55 = vadd.f32 %v5129_v26, %v2030_v41  ;;  %v4182_v56 = vpop.f32.mrb[82].mxu0  ;;  %v2948_v2 = vmax.f32 %v2570_v34, 0.0 }
 0x189   : > { %v2033_v59 = vpop.f32.mrb[83].mxu0  ;;  %v2042_v14 = vadd.f32 %v5129_v26, %v4182_v56  ;;  %v3228_v20 = vadd.f32 %v3227_v11, %v2943_v61  ;;  %v2815_v25 = vmax.f32 %v2039_v3, 0.0 }
 0x18a   : > { %v2813_v4 = vmax.f32 %v2031_v55, 0.0  ;;  %v3077_v5 = vadd.f32 %v3076_v54, %v2812_v53  ;;  %v2034_v7 = vadd.f32 %v5129_v26, %v2033_v59  ;;  %v4318_v54 = vpop.f32.mrb[78].mxu1 }
 0x18b   : > { %v3229_v32 = vadd.f32 %v3228_v20, %v2944_v0  ;;  %v2816_v38 = vmax.f32 %v2042_v14, 0.0  ;;  %v2577_v61 = vpop.f32.mrb[79].mxu1  ;;  %v2949_v0 = vmax.f32 %v2575_v50, 0.0  ;;  %v2586_v20 = vadd.f32 %v5129_v26, %v4318_v54 }
 0x18c   : > { %v3078_v13 = vadd.f32 %v3077_v5, %v2813_v4  ;;  %v2814_v17 = vmax.f32 %v2034_v7, 0.0  ;;  %v2578_v5 = vadd.f32 %v5129_v26, %v2577_v61 }
 0x18d   : > { %v3230_v53 = vadd.f32 %v3229_v32, %v2945_v22  ;;  %v4321_v22 = vpop.f32.mrb[80].mxu1 }
 0x18e   : > { %v3079_v27 = vadd.f32 %v3078_v13, %v2814_v17  ;;  %v4185_v29 = vpop.f32.mrb[84].mxu0  ;;  %v2950_v21 = vmax.f32 %v2578_v5, 0.0  ;;  %v2590_v32 = vpop.f32.mrb[81].mxu1  ;;  %v2599_v61 = vadd.f32 %v5129_v26, %v4321_v22 }
 0x18f   : > { %v2046_v30 = vpop.f32.mrb[85].mxu0  ;;  %v2055_v55 = vadd.f32 %v5129_v26, %v4185_v29  ;;  %v3231_v62 = vadd.f32 %v3230_v53, %v2946_v36  ;;  %v2951_v36 = vmax.f32 %v2583_v8, 0.0  ;;  %v2591_v37 = vadd.f32 %v5129_v26, %v2590_v32 }
 0x190   : > { %v3080_v40 = vadd.f32 %v3079_v27, %v2815_v25  ;;  %v2047_v48 = vadd.f32 %v5129_v26, %v2046_v30  ;;  %v4186_v41 = vpop.f32.mrb[86].mxu0  ;;  %v2952_v53 = vmax.f32 %v2586_v20, 0.0  ;;  %v4566_v20 = vld [vmem:[%s5400_s3 + $0x30] sm:$0xff]  }
 0x191   : > { %v2049_v46 = vpop.f32.mrb[87].mxu0  ;;  %v2058_v3 = vadd.f32 %v5129_v26, %v4186_v41  ;;  %v3232_v7 = vadd.f32 %v3231_v62, %v2947_v47  ;;  %v2819_v11 = vmax.f32 %v2055_v55, 0.0  ;;  %4368 = vmatpush3.bf16.msra.mxu1 %v4566_v20 }
 0x192   : > { %v2817_v56 = vmax.f32 %v2047_v48, 0.0  ;;  %v3081_v57 = vadd.f32 %v3080_v40, %v2816_v38  ;;  %v2050_v59 = vadd.f32 %v5129_v26, %v2049_v46  ;;  %v4322_v40 = vpop.f32.mrb[82].mxu1  ;;  %4369 = vmatprep.subr.bf16.mxu1 %v4602_v43 }
 0x193   : > { %v3233_v19 = vadd.f32 %v3232_v7, %v2948_v2  ;;  %v2820_v25 = vmax.f32 %v2058_v3, 0.0  ;;  %v2593_v47 = vpop.f32.mrb[83].mxu1  ;;  %v2953_v2 = vmax.f32 %v2591_v37, 0.0  ;;  %v2602_v7 = vadd.f32 %v5129_v26, %v4322_v40  ;;  %v4567_v40 = vld [vmem:[%s5400_s3 + $0x38] sm:$0xff]  }
 0x194   : > { %v3082_v49 = vadd.f32 %v3081_v57, %v2817_v56  ;;  %v2818_v4 = vmax.f32 %v2050_v59, 0.0  ;;  %v2594_v57 = vadd.f32 %v5129_v26, %v2593_v47 }
 0x195   : > { %v3234_v38 = vadd.f32 %v3233_v19, %v2949_v0  ;;  %v4325_v0 = vpop.f32.mrb[84].mxu1  ;;  %4370 = vmatpush3.bf16.msra.mxu1 %v4567_v40 }
 0x196   : > { %v3083_v13 = vadd.f32 %v3082_v49, %v2818_v4  ;;  %v4189_v14 = vpop.f32.mrb[88].mxu0  ;;  %v2954_v8 = vmax.f32 %v2594_v57, 0.0  ;;  %v2606_v19 = vpop.f32.mrb[85].mxu1  ;;  %4375 = vmatprep.subr.bf16.mxu1 %v4602_v43 }
 0x197   : > { %v2062_v17 = vpop.f32.mrb[89].mxu0  ;;  %v2071_v48 = vadd.f32 %v5129_v26, %v4189_v14  ;;  %v3235_v50 = vadd.f32 %v3234_v38, %v2950_v21  ;;  %v2615_v38 = vadd.f32 %v5129_v26, %v4325_v0 }
 0x198   : > { %v3084_v27 = vadd.f32 %v3083_v13, %v2819_v11  ;;  %v2063_v29 = vadd.f32 %v5129_v26, %v2062_v17  ;;  %v4190_v30 = vpop.f32.mrb[90].mxu0 }
 0x199   : > { %v2065_v34 = vpop.f32.mrb[91].mxu0  ;;  %v2074_v55 = vadd.f32 %v5129_v26, %v4190_v30  ;;  %v3236_v59 = vadd.f32 %v3235_v50, %v2951_v36  ;;  %v2823_v62 = vmax.f32 %v2071_v48, 0.0  ;;  %v4326_v30 = vpop.f32.mrb[86].mxu1 }
 0x19a   : > { %v2821_v41 = vmax.f32 %v2063_v29, 0.0  ;;  %v3085_v44 = vadd.f32 %v3084_v27, %v2820_v25  ;;  %v2066_v46 = vadd.f32 %v5129_v26, %v2065_v34  ;;  %v2955_v25 = vmax.f32 %v2599_v61, 0.0  ;;  %v2609_v37 = vpop.f32.mrb[87].mxu1 }
 0x19b   : > { %v3237_v5 = vadd.f32 %v3236_v59, %v2952_v53  ;;  %v2824_v11 = vmax.f32 %v2074_v55, 0.0  ;;  %v2607_v29 = vadd.f32 %v5129_v26, %v2606_v19  ;;  %v2618_v50 = vadd.f32 %v5129_v26, %v4326_v30 }
 0x19c   : > { %v3086_v54 = vadd.f32 %v3085_v44, %v2821_v41  ;;  %v2822_v56 = vmax.f32 %v2066_v46, 0.0  ;;  %v2956_v41 = vmax.f32 %v2602_v7, 0.0  ;;  %v2959_v61 = vmax.f32 %v2615_v38, 0.0 }
 0x19d   : > { %v3238_v27 = vadd.f32 %v3237_v5, %v2953_v2  ;;  %v2957_v46 = vmax.f32 %v2607_v29, 0.0  ;;  %v2960_v0 = vmax.f32 %v2618_v50, 0.0 }
 0x19e   : > { %v3087_v49 = vadd.f32 %v3086_v54, %v2822_v56  ;;  %v4193_v3 = vpop.f32.mrb[92].mxu0  ;;  %v2610_v54 = vadd.f32 %v5129_v26, %v2609_v37 }
 0x19f   : > { %v2078_v4 = vpop.f32.mrb[93].mxu0  ;;  %v2087_v21 = vadd.f32 %v5129_v26, %v4193_v3  ;;  %v3239_v44 = vadd.f32 %v3238_v27, %v2954_v8 }
 0x1a0   : > { %v3088_v13 = vadd.f32 %v3087_v49, %v2823_v62  ;;  %v2079_v14 = vadd.f32 %v5129_v26, %v2078_v4  ;;  %v4194_v17 = vpop.f32.mrb[94].mxu0  ;;  %v2958_v2 = vmax.f32 %v2610_v54, 0.0  ;;  %v4329_v4 = vpop.f32.mrb[88].mxu1 }
 0x1a1   : > { %v2081_v22 = vpop.f32.mrb[95].mxu0  ;;  %v2090_v48 = vadd.f32 %v5129_v26, %v4194_v17  ;;  %v3240_v55 = vadd.f32 %v3239_v44, %v2955_v25  ;;  %v2827_v56 = vmax.f32 %v2087_v21, 0.0  ;;  %v2631_v30 = vadd.f32 %v5129_v26, %v4329_v4 }
 0x1a2   : > { %v2825_v32 = vmax.f32 %v2079_v14, 0.0  ;;  %v3089_v34 = vadd.f32 %v3088_v13, %v2824_v11  ;;  %v2082_v36 = vadd.f32 %v5129_v26, %v2081_v22  ;;  %v3248_v11 = vadd.f32 %v2958_v2, %v2957_v46  ;;  %v2622_v13 = vpop.f32.mrb[89].mxu1 }
 0x1a3   : > { %v2828_v62 = vmax.f32 %v2090_v48, 0.0  ;;  %v5202_v3 = vadd.f32 %v3240_v55, %v2956_v41  ;;  %v2623_v17 = vadd.f32 %v5129_v26, %v2622_v13  ;;  %v4330_v19 = vpop.f32.mrb[90].mxu1  ;;  %v2963_v54 = vmax.f32 %v2631_v30, 0.0 }
 0x1a4   : > { %v3090_v47 = vadd.f32 %v3089_v34, %v2825_v32  ;;  %v2826_v53 = vmax.f32 %v2082_v36, 0.0  ;;  %v3249_v25 = vadd.f32 %v3248_v11, %v2959_v61  ;;  %v2625_v27 = vpop.f32.mrb[91].mxu1  ;;  %v2634_v40 = vadd.f32 %v5129_v26, %v4330_v19 }
 0x1a5   : > { %v2961_v32 = vmax.f32 %v2623_v17, 0.0  ;;  %v2626_v48 = vadd.f32 %v5129_v26, %v2625_v27 }
 0x1a6   : > { %v3091_v57 = vadd.f32 %v3090_v47, %v2826_v53  ;;  %v4197_v59 = vpop.f32.mrb[96].mxu0  ;;  %v3250_v37 = vadd.f32 %v3249_v25, %v2960_v0 }
 0x1a7   : > { %v2094_v49 = vpop.f32.mrb[97].mxu0  ;;  %v2103_v21 = vadd.f32 %v5129_v26, %v4197_v59  ;;  %v2962_v55 = vmax.f32 %v2626_v48, 0.0 }
 0x1a8   : > { %v3092_v5 = vadd.f32 %v3091_v57, %v2827_v56  ;;  %v2095_v7 = vadd.f32 %v5129_v26, %v2094_v49  ;;  %v4198_v8 = vpop.f32.mrb[98].mxu0  ;;  %v3251_v53 = vadd.f32 %v3250_v37, %v2961_v32  ;;  %v4333_v56 = vpop.f32.mrb[92].mxu1 }
 0x1a9   : > { %v2097_v14 = vpop.f32.mrb[99].mxu0  ;;  %v2106_v29 = vadd.f32 %v5129_v26, %v4198_v8  ;;  %v2831_v44 = vmax.f32 %v2103_v21, 0.0  ;;  %v2638_v49 = vpop.f32.mrb[93].mxu1  ;;  %v2647_v30 = vadd.f32 %v5129_v26, %v4333_v56 }
 0x1aa   : > { %v3093_v20 = vadd.f32 %v3092_v5, %v2828_v62  ;;  %v2098_v22 = vadd.f32 %v5129_v26, %v2097_v14  ;;  %v2829_v36 = vmax.f32 %v2095_v7, 0.0  ;;  %v2964_v7 = vmax.f32 %v2634_v40, 0.0  ;;  %v4334_v0 = vpop.f32.mrb[94].mxu1 }
 0x1ab   : > { %v2832_v59 = vmax.f32 %v2106_v29, 0.0  ;;  %v3252_v8 = vadd.f32 %v3251_v53, %v2962_v55  ;;  %v2641_v19 = vpop.f32.mrb[95].mxu1  ;;  %v2639_v29 = vadd.f32 %v5129_v26, %v2638_v49 }
 0x1ac   : > { %v3094_v34 = vrot.slane %v3093_v20, 4  ;;  %v2830_v38 = vmax.f32 %v2098_v22, 0.0  ;;  %v4337_v53 = vpop.f32.mrb[96].mxu1 }
 0x1ad   : > { %v3253_v21 = vadd.f32 %v3252_v8, %v2963_v54  ;;  %v2965_v48 = vmax.f32 %v2639_v29, 0.0 }
 0x1ae   : > { %v3095_v41 = vadd.f32 %v3094_v34, %v3093_v20  ;;  %v3100_v46 = vadd.f32 %v2830_v38, %v2829_v36  ;;  %v4201_v47 = vpop.f32.mrb[100].mxu0  ;;  %v2642_v34 = vadd.f32 %v5129_v26, %v2641_v19 }
 0x1af   : > { %v2110_v50 = vpop.f32.mrb[101].mxu0  ;;  %v2119_v4 = vadd.f32 %v5129_v26, %v4201_v47  ;;  %v3254_v32 = vadd.f32 %v3253_v21, %v2964_v7 }
 0x1b0   : > { %v3096_v57 = vrot.slane %v3095_v41, 2  ;;  %v3101_v61 = vadd.f32 %v3100_v46, %v2831_v44  ;;  %v2111_v2 = vadd.f32 %v5129_v26, %v2110_v50  ;;  %v4202_v62 = vpop.f32.mrb[102].mxu0  ;;  %v2650_v46 = vadd.f32 %v5129_v26, %v4334_v0 }
 0x1b1   : > { %v2113_v5 = vpop.f32.mrb[103].mxu0  ;;  %v2122_v20 = vadd.f32 %v5129_v26, %v4202_v62  ;;  %v2835_v38 = vmax.f32 %v2119_v4, 0.0  ;;  %v2966_v47 = vmax.f32 %v2642_v34, 0.0  ;;  %v2967_v62 = vmax.f32 %v2647_v30, 0.0 }
 0x1b2   : > { %v3097_v11 = vadd.f32 %v3096_v57, %v3095_v41  ;;  %v2833_v13 = vmax.f32 %v2111_v2, 0.0  ;;  %v3102_v14 = vadd.f32 %v3101_v61, %v2832_v59  ;;  %v2114_v17 = vadd.f32 %v5129_v26, %v2113_v5  ;;  %v2654_v59 = vpop.f32.mrb[97].mxu1 }
 0x1b3   : > { %v2836_v41 = vmax.f32 %v2122_v20, 0.0  ;;  %v3255_v57 = vadd.f32 %v3254_v32, %v2965_v48  ;;  %v2655_v49 = vadd.f32 %v5129_v26, %v2654_v59  ;;  %v4338_v4 = vpop.f32.mrb[98].mxu1 }
 0x1b4   : > { %v3098_v22 = vrot.slane %v3097_v11, 1  ;;  %v3103_v25 = vadd.f32 %v3102_v14, %v2833_v13  ;;  %v2834_v27 = vmax.f32 %v2114_v17, 0.0  ;;  %v2968_v13 = vmax.f32 %v2650_v46, 0.0 }
 0x1b5   : > { %v3256_v14 = vadd.f32 %v3255_v57, %v2966_v47 }
 0x1b6   : > { %v3099_v36 = vadd.f32 %v3098_v22, %v3097_v11  ;;  %v3104_v37 = vadd.f32 %v3103_v25, %v2834_v27  ;;  %v4205_v40 = vpop.f32.mrb[104].mxu0  ;;  %v2657_v11 = vpop.f32.mrb[99].mxu1  ;;  %v2663_v25 = vadd.f32 %v5129_v26, %v4337_v53  ;;  %v2969_v27 = vmax.f32 %v2655_v49, 0.0 }
 0x1b7   : > { %v2126_v44 = vpop.f32.mrb[105].mxu0  ;;  %v2135_v61 = vadd.f32 %v5129_v26, %v4205_v40  ;;  %v2658_v21 = vadd.f32 %v5129_v26, %v2657_v11  ;;  %v3257_v22 = vadd.f32 %v3256_v14, %v2967_v62 }
 0x1b8   : > { %v3288_v50 = vmul.f32 0.00390625, %v3099_v36  ;;  %v3105_v54 = vadd.f32 %v3104_v37, %v2835_v38  ;;  %v2127_v55 = vadd.f32 %v5129_v26, %v2126_v44  ;;  %v4206_v56 = vpop.f32.mrb[106].mxu0  ;;  %v2666_v36 = vadd.f32 %v5129_v26, %v4338_v4  ;;  %v4341_v37 = vpop.f32.mrb[100].mxu1 }
 0x1b9   : > { %v2129_v2 = vpop.f32.mrb[107].mxu0  ;;  %v2138_v19 = vadd.f32 %v5129_v26, %v4206_v56  ;;  %v2839_v29 = vmax.f32 %v2135_v61, 0.0  ;;  %v3258_v34 = vadd.f32 %v3257_v22, %v2968_v13  ;;  %v2970_v38 = vmax.f32 %v2658_v21, 0.0  ;;  %v2670_v46 = vpop.f32.mrb[101].mxu1 }
 0x1ba   : > { %v5226_v5 = vsel %vm3305_vm4, %v3288_v50, %v5142_v28  ;;  %v2837_v7 = vmax.f32 %v2127_v55, 0.0  ;;  %v3106_v8 = vadd.f32 %v3105_v54, %v2836_v41  ;;  %v2130_v0 = vadd.f32 %v5129_v26, %v2129_v2  ;;  %v4342_v55 = vpop.f32.mrb[102].mxu1 }
 0x1bb   : > { %v2840_v40 = vmax.f32 %v2138_v19, 0.0  ;;  %v2971_v50 = vmax.f32 %v2663_v25, 0.0  ;;  %v3259_v54 = vadd.f32 %v3258_v34, %v2969_v27  ;;  %v2671_v53 = vadd.f32 %v5129_v26, %v2670_v46  ;;  %v2673_v2 = vpop.f32.mrb[103].mxu1 }
 0x1bc   : > { %v3107_v17 = vadd.f32 %v3106_v8, %v2837_v7  ;;  %v2838_v20 = vmax.f32 %v2130_v0, 0.0  ;;  %v2972_v62 = vmax.f32 %v2666_v36, 0.0  ;;  %v2674_v0 = vadd.f32 %v5129_v26, %v2673_v2 }
 0x1bd   : > { %v3260_v49 = vadd.f32 %v3259_v54, %v2970_v38  ;;  %v2679_v13 = vadd.f32 %v5129_v26, %v4341_v37  ;;  %v2973_v14 = vmax.f32 %v2671_v53, 0.0  ;;  %v2682_v25 = vadd.f32 %v5129_v26, %v4342_v55 }
 0x1be   : > { %v3108_v28 = vadd.f32 %v3107_v17, %v2838_v20  ;;  %v4209_v30 = vpop.f32.mrb[108].mxu0  ;;  %v2974_v27 = vmax.f32 %v2674_v0, 0.0 }
 0x1bf   : > { %v2142_v32 = vpop.f32.mrb[109].mxu0  ;;  %v2151_v56 = vadd.f32 %v5129_v26, %v4209_v30  ;;  %v3261_v11 = vadd.f32 %v3260_v49, %v2971_v50  ;;  %v2976_v53 = vmax.f32 %v2682_v25, 0.0 }
 0x1c0   : > { %v3109_v48 = vadd.f32 %v3108_v28, %v2839_v29  ;;  %v2143_v41 = vadd.f32 %v5129_v26, %v2142_v32  ;;  %v4210_v44 = vpop.f32.mrb[110].mxu0  ;;  %v4345_v29 = vpop.f32.mrb[104].mxu1 }
 0x1c1   : > { %v2145_v47 = vpop.f32.mrb[111].mxu0  ;;  %v2154_v7 = vadd.f32 %v5129_v26, %v4210_v44  ;;  %v2843_v17 = vmax.f32 %v2151_v56, 0.0  ;;  %v3262_v22 = vadd.f32 %v3261_v11, %v2972_v62  ;;  %v2686_v36 = vpop.f32.mrb[105].mxu1  ;;  %v2695_v62 = vadd.f32 %v5129_v26, %v4345_v29 }
 0x1c2   : > { %v2841_v57 = vmax.f32 %v2143_v41, 0.0  ;;  %v3110_v59 = vadd.f32 %v3109_v48, %v2840_v40  ;;  %v2146_v61 = vadd.f32 %v5129_v26, %v2145_v47  ;;  %v2975_v40 = vmax.f32 %v2679_v13, 0.0  ;;  %v4346_v41 = vpop.f32.mrb[106].mxu1 }
 0x1c3   : > { %v2844_v28 = vmax.f32 %v2154_v7, 0.0  ;;  %v3263_v48 = vadd.f32 %v3262_v22, %v2973_v14  ;;  %v2687_v37 = vadd.f32 %v5129_v26, %v2686_v36  ;;  %v2689_v54 = vpop.f32.mrb[107].mxu1  ;;  %v2698_v13 = vadd.f32 %v5129_v26, %v4346_v41 }
 0x1c4   : > { %v3111_v4 = vadd.f32 %v3110_v59, %v2841_v57  ;;  %v2842_v8 = vmax.f32 %v2146_v61, 0.0  ;;  %v2690_v61 = vadd.f32 %v5129_v26, %v2689_v54 }
 0x1c5   : > { %v3264_v55 = vadd.f32 %v3263_v48, %v2974_v27  ;;  %v2977_v49 = vmax.f32 %v2687_v37, 0.0  ;;  %v2980_v37 = vmax.f32 %v2698_v13, 0.0 }
 0x1c6   : > { %v3112_v19 = vadd.f32 %v3111_v4, %v2842_v8  ;;  %v4213_v20 = vpop.f32.mrb[112].mxu0  ;;  %v2978_v14 = vmax.f32 %v2690_v61, 0.0 }
 0x1c7   : > { %v2158_v21 = vpop.f32.mrb[113].mxu0  ;;  %v2167_v44 = vadd.f32 %v5129_v26, %v4213_v20  ;;  %v3265_v2 = vadd.f32 %v3264_v55, %v2975_v40 }
 0x1c8   : > { %v3113_v30 = vadd.f32 %v3112_v19, %v2843_v17  ;;  %v2159_v32 = vadd.f32 %v5129_v26, %v2158_v21  ;;  %v4214_v34 = vpop.f32.mrb[114].mxu0  ;;  %v4349_v17 = vpop.f32.mrb[108].mxu1 }
 0x1c9   : > { %v2161_v38 = vpop.f32.mrb[115].mxu0  ;;  %v2170_v57 = vadd.f32 %v5129_v26, %v4214_v34  ;;  %v2847_v4 = vmax.f32 %v2167_v44, 0.0  ;;  %v3266_v11 = vadd.f32 %v3265_v2, %v2976_v53  ;;  %v2702_v25 = vpop.f32.mrb[109].mxu1  ;;  %v2711_v53 = vadd.f32 %v5129_v26, %v4349_v17 }
 0x1ca   : > { %v2845_v46 = vmax.f32 %v2159_v32, 0.0  ;;  %v3114_v47 = vadd.f32 %v3113_v30, %v2844_v28  ;;  %v2162_v50 = vadd.f32 %v5129_v26, %v2161_v38  ;;  %v2979_v28 = vmax.f32 %v2695_v62, 0.0  ;;  %v4350_v32 = vpop.f32.mrb[110].mxu1 }
 0x1cb   : > { %v2848_v19 = vmax.f32 %v2170_v57, 0.0  ;;  %v3267_v30 = vadd.f32 %v3266_v11, %v2977_v49  ;;  %v2703_v29 = vadd.f32 %v5129_v26, %v2702_v25  ;;  %v2705_v48 = vpop.f32.mrb[111].mxu1  ;;  %v2714_v62 = vadd.f32 %v5129_v26, %v4350_v32 }
 0x1cc   : > { %v3115_v56 = vadd.f32 %v3114_v47, %v2845_v46  ;;  %v2846_v59 = vmax.f32 %v2162_v50, 0.0  ;;  %v2706_v50 = vadd.f32 %v5129_v26, %v2705_v48 }
 0x1cd   : > { %v3268_v41 = vadd.f32 %v3267_v30, %v2978_v14  ;;  %v2981_v55 = vmax.f32 %v2703_v29, 0.0  ;;  %v2984_v29 = vmax.f32 %v2714_v62, 0.0 }
 0x1ce   : > { %v3116_v7 = vadd.f32 %v3115_v56, %v2846_v59  ;;  %v4217_v8 = vpop.f32.mrb[116].mxu0  ;;  %v2982_v49 = vmax.f32 %v2706_v50, 0.0 }
 0x1cf   : > { %v2174_v0 = vpop.f32.mrb[117].mxu0  ;;  %v2183_v34 = vadd.f32 %v5129_v26, %v4217_v8  ;;  %v3269_v54 = vadd.f32 %v3268_v41, %v2979_v28 }
 0x1d0   : > { %v3117_v20 = vadd.f32 %v3116_v7, %v2847_v4  ;;  %v2175_v21 = vadd.f32 %v5129_v26, %v2174_v0  ;;  %v4218_v22 = vpop.f32.mrb[118].mxu0  ;;  %v4353_v4 = vpop.f32.mrb[112].mxu1 }
 0x1d1   : > { %v2177_v27 = vpop.f32.mrb[119].mxu0  ;;  %v2186_v46 = vadd.f32 %v5129_v26, %v4218_v22  ;;  %v2851_v56 = vmax.f32 %v2183_v34, 0.0  ;;  %v3270_v2 = vadd.f32 %v3269_v54, %v2980_v37  ;;  %v2718_v13 = vpop.f32.mrb[113].mxu1  ;;  %v2727_v37 = vadd.f32 %v5129_v26, %v4353_v4 }
 0x1d2   : > { %v2849_v36 = vmax.f32 %v2175_v21, 0.0  ;;  %v3118_v38 = vadd.f32 %v3117_v20, %v2848_v19  ;;  %v2178_v40 = vadd.f32 %v5129_v26, %v2177_v27  ;;  %v2983_v19 = vmax.f32 %v2711_v53, 0.0  ;;  %v4354_v21 = vpop.f32.mrb[114].mxu1 }
 0x1d3   : > { %v2852_v7 = vmax.f32 %v2186_v46, 0.0  ;;  %v3271_v20 = vadd.f32 %v3270_v2, %v2981_v55  ;;  %v2719_v17 = vadd.f32 %v5129_v26, %v2718_v13  ;;  %v2721_v30 = vpop.f32.mrb[115].mxu1  ;;  %v2730_v53 = vadd.f32 %v5129_v26, %v4354_v21 }
 0x1d4   : > { %v3119_v44 = vadd.f32 %v3118_v38, %v2849_v36  ;;  %v2850_v47 = vmax.f32 %v2178_v40, 0.0  ;;  %v2722_v40 = vadd.f32 %v5129_v26, %v2721_v30  ;;  %v2987_v62 = vmax.f32 %v2727_v37, 0.0 }
 0x1d5   : > { %v3272_v32 = vadd.f32 %v3271_v20, %v2982_v49  ;;  %v2985_v41 = vmax.f32 %v2719_v17, 0.0 }
 0x1d6   : > { %v3120_v57 = vadd.f32 %v3119_v44, %v2850_v47  ;;  %v4221_v59 = vpop.f32.mrb[120].mxu0  ;;  %v2986_v55 = vmax.f32 %v2722_v40, 0.0 }
 0x1d7   : > { %v2190_v61 = vpop.f32.mrb[121].mxu0  ;;  %v2199_v22 = vadd.f32 %v5129_v26, %v4221_v59  ;;  %v3273_v48 = vadd.f32 %v3272_v32, %v2983_v19 }
 0x1d8   : > { %v3121_v8 = vadd.f32 %v3120_v57, %v2851_v56  ;;  %v2191_v0 = vadd.f32 %v5129_v26, %v2190_v61  ;;  %v4222_v11 = vpop.f32.mrb[122].mxu0 }
 0x1d9   : > { %v2193_v14 = vpop.f32.mrb[123].mxu0  ;;  %v2202_v36 = vadd.f32 %v5129_v26, %v4222_v11  ;;  %v2855_v44 = vmax.f32 %v2199_v22, 0.0  ;;  %v3274_v54 = vadd.f32 %v3273_v48, %v2984_v29  ;;  %v2988_v11 = vmax.f32 %v2730_v53, 0.0 }
 0x1da   : > { %v2853_v25 = vmax.f32 %v2191_v0, 0.0  ;;  %v3122_v27 = vadd.f32 %v3121_v8, %v2852_v7  ;;  %v2194_v28 = vadd.f32 %v5129_v26, %v2193_v14 }
 0x1db   : > { %v2856_v56 = vmax.f32 %v2202_v36, 0.0  ;;  %v3275_v49 = vadd.f32 %v3274_v54, %v2985_v41 }
 0x1dc   : > { %v3123_v34 = vadd.f32 %v3122_v27, %v2853_v25  ;;  %v2854_v38 = vmax.f32 %v2194_v28, 0.0 }
 0x1dd   : > { %v3276_v13 = vadd.f32 %v3275_v49, %v2986_v55 }
 0x1de   : > { %v3124_v46 = vadd.f32 %v3123_v34, %v2854_v38  ;;  %v4225_v47 = vpop.f32.mrb[124].mxu0 }
 0x1df   : > { %v2206_v50 = vpop.f32.mrb[125].mxu0  ;;  %v2215_v7 = vadd.f32 %v5129_v26, %v4225_v47  ;;  %v3277_v17 = vadd.f32 %v3276_v13, %v2987_v62 }
 0x1e0   : > { %v3125_v57 = vadd.f32 %v3124_v46, %v2855_v44  ;;  %v2207_v59 = vadd.f32 %v5129_v26, %v2206_v50  ;;  %v4226_v61 = vpop.f32.mrb[126].mxu0 }
 0x1e1   : > { %v2209_v2 = vpop.f32.mrb[127].mxu0  ;;  %v2218_v19 = vadd.f32 %v5129_v26, %v4226_v61  ;;  %v2859_v21 = vmax.f32 %v2215_v7, 0.0  ;;  %v5269_v28 = vadd.f32 %v3277_v17, %v2988_v11 }
 0x1e2   : > { %v2857_v4 = vmax.f32 %v2207_v59, 0.0  ;;  %v3126_v8 = vadd.f32 %v3125_v57, %v2856_v56  ;;  %v2210_v0 = vadd.f32 %v5129_v26, %v2209_v2 }
 0x1e3   : > { %v2860_v30 = vmax.f32 %v2218_v19, 0.0 }
 0x1e4   : > { %v3127_v14 = vadd.f32 %v3126_v8, %v2857_v4  ;;  %v2858_v20 = vmax.f32 %v2210_v0, 0.0  ;;  %v5280_v0 = vld [vmem:[%s5399_s2] ss:$0 sm:$0xff] }
 0x1e6   : > { %v3128_v22 = vadd.f32 %v3127_v14, %v2858_v20  ;;  %v4229_v25 = vpop.f32.mrb[128].mxu0 }
 0x1e7   : > { %v2222_v27 = vpop.f32.mrb[129].mxu0  ;;  %v2231_v40 = vadd.f32 %v5129_v26, %v4229_v25 }
 0x1e8   : > { %v3129_v29 = vadd.f32 %v3128_v22, %v2859_v21  ;;  %v2223_v32 = vadd.f32 %v5129_v26, %v2222_v27  ;;  %v4230_v34 = vpop.f32.mrb[130].mxu0 }
 0x1e9   : > { %v2225_v36 = vpop.f32.mrb[131].mxu0  ;;  %v2234_v44 = vadd.f32 %v5129_v26, %v4230_v34  ;;  %v2863_v50 = vmax.f32 %v2231_v40, 0.0 }
 0x1ea   : > { %v3130_v38 = vadd.f32 %v3129_v29, %v2860_v30  ;;  %v2226_v48 = vadd.f32 %v5129_v26, %v2225_v36  ;;  %v2861_v41 = vmax.f32 %v2223_v32, 0.0 }
 0x1eb   : > { %v2864_v57 = vmax.f32 %v2234_v44, 0.0 }
 0x1ec   : > { %v3131_v37 = vrot.slane %v3130_v38, 4  ;;  %v2862_v46 = vmax.f32 %v2226_v48, 0.0 }
 0x1ee   : > { %v3132_v47 = vadd.f32 %v3131_v37, %v3130_v38  ;;  %v3137_v54 = vadd.f32 %v2862_v46, %v2861_v41  ;;  %v4233_v53 = vpop.f32.mrb[132].mxu0 }
 0x1ef   : > { %v2238_v55 = vpop.f32.mrb[133].mxu0  ;;  %v2247_v62 = vadd.f32 %v5129_v26, %v4233_v53 }
 0x1f0   : > { %v3133_v56 = vrot.slane %v3132_v47, 2  ;;  %v3138_v59 = vadd.f32 %v3137_v54, %v2863_v50  ;;  %v2239_v61 = vadd.f32 %v5129_v26, %v2238_v55  ;;  %v4234_v2 = vpop.f32.mrb[134].mxu0  ;;  %v2271_v50 = vadd.f32 %v5280_v0, %v4941_v31 }
 0x1f1   : > { %v2241_v49 = vpop.f32.mrb[135].mxu0  ;;  %v2250_v19 = vadd.f32 %v5280_v0, %v4234_v2  ;;  %v2867_v21 = vmax.f32 %v2247_v62, 0.0  ;;  %v2274_v55 = vadd.f32 %v5280_v0, %v4948_v39  ;;  %v2282_v2 = vadd.f32 %v5280_v0, %v4943_v33 }
 0x1f2   : > { %v3134_v7 = vadd.f32 %v3133_v56, %v3132_v47  ;;  %v2865_v4 = vmax.f32 %v2239_v61, 0.0  ;;  %v3139_v8 = vadd.f32 %v3138_v59, %v2864_v57  ;;  %v2242_v11 = vadd.f32 %v5280_v0, %v2241_v49 }
 0x1f3   : > { %v2868_v30 = vmax.f32 %v2250_v19, 0.0  ;;  %v2873_v59 = vmax.f32 %v2271_v50, 0.0  ;;  %v2874_v62 = vmax.f32 %v2274_v55, 0.0  ;;  %v2287_v31 = vadd.f32 %v5280_v0, %v4965_v58 }
 0x1f4   : > { %v3135_v13 = vrot.slane %v3134_v7, 1  ;;  %v3140_v14 = vadd.f32 %v3139_v8, %v2865_v4  ;;  %v2866_v20 = vmax.f32 %v2242_v11, 0.0  ;;  %v2876_v8 = vmax.f32 %v2282_v2, 0.0 }
 0x1f5   : > { %v2290_v39 = vadd.f32 %v5280_v0, %v4971_v1  ;;  %v2298_v33 = vadd.f32 %v5280_v0, %v4967_v60  ;;  %v2303_v58 = vadd.f32 %v5280_v0, %v4982_v16  ;;  %v2306_v1 = vadd.f32 %v5280_v0, %v4988_v23 }
 0x1f6   : > { %v3136_v17 = vadd.f32 %v3135_v13, %v3134_v7  ;;  %v3141_v22 = vadd.f32 %v3140_v14, %v2866_v20  ;;  %v4237_v26 = vpop.f32.mrb[136].mxu0  ;;  %v2877_v13 = vmax.f32 %v2287_v31, 0.0  ;;  %v2314_v60 = vadd.f32 %v5280_v0, %v4984_v18 }
 0x1f7   : > { %v2254_v25 = vpop.f32.mrb[137].mxu0  ;;  %v2263_v36 = vadd.f32 %v5280_v0, %v4237_v26  ;;  %v2878_v19 = vmax.f32 %v2290_v39, 0.0  ;;  %v2319_v16 = vadd.f32 %v5280_v0, %v4998_v42  ;;  %v2322_v23 = vadd.f32 %v5280_v0, %v5004_v52 }
 0x1f8   : > { %v3289_v27 = vmul.f32 0.00390625, %v3136_v17  ;;  %v3142_v29 = vadd.f32 %v3141_v22, %v2867_v21  ;;  %v2255_v32 = vadd.f32 %v5280_v0, %v2254_v25  ;;  %v4238_v34 = vpop.f32.mrb[138].mxu0  ;;  %v2880_v22 = vmax.f32 %v2298_v33, 0.0 }
 0x1f9   : > { %v2257_v38 = vpop.f32.mrb[139].mxu0  ;;  %v2266_v46 = vadd.f32 %v5280_v0, %v4238_v34  ;;  %v2871_v54 = vmax.f32 %v2263_v36, 0.0  ;;  %v2881_v25 = vmax.f32 %v2303_v58, 0.0  ;;  %v2884_v36 = vmax.f32 %v2314_v60, 0.0 }
 0x1fa   : > { %v5287_v40 = vsel %vm3307_vm5, %v3289_v27, %v5226_v5  ;;  %v2869_v48 = vmax.f32 %v2255_v32, 0.0  ;;  %v3143_v37 = vadd.f32 %v3142_v29, %v2868_v30  ;;  %v2258_v41 = vadd.f32 %v5280_v0, %v2257_v38 }
 0x1fb   : > { %v2872_v56 = vmax.f32 %v2266_v46, 0.0  ;;  %v2279_v5 = vadd.f32 %v5280_v0, %v4936_v24  ;;  %v2295_v24 = vadd.f32 %v5280_v0, %v4960_v51  ;;  %v2311_v51 = vadd.f32 %v5280_v0, %v4978_v10 }
 0x1fc   : > { %v3144_v44 = vadd.f32 %v3143_v37, %v2869_v48  ;;  %v2870_v47 = vmax.f32 %v2258_v41, 0.0  ;;  %v2882_v30 = vmax.f32 %v2306_v1, 0.0  ;;  %v2327_v10 = vadd.f32 %v5280_v0, %v4994_v35 }
 0x1fd   : > { %v2875_v7 = vmax.f32 %v2279_v5, 0.0  ;;  %v2879_v17 = vmax.f32 %v2295_v24, 0.0  ;;  %v2883_v32 = vmax.f32 %v2311_v51, 0.0  ;;  %v2885_v48 = vmax.f32 %v2319_v16, 0.0  ;;  %v4569_v16 = vld [vmem:[%s5403_s6 + $0x8] sm:$0xff]  }
 0x1fe   : > { %v3145_v53 = vadd.f32 %v3144_v44, %v2870_v47  ;;  %v2330_v18 = vadd.f32 %v5280_v0, %v5000_v45  ;;  %v2886_v41 = vmax.f32 %v2322_v23, 0.0  ;;  %v2887_v46 = vmax.f32 %v2327_v10, 0.0  ;;  %v4573_v23 = vld [vmem:[%s5403_s6 + $0x28] sm:$0xff]   ;;  %v4575_v10 = vld [vmem:[%s5403_s6 + $0x38] sm:$0xff]  }
 0x1ff   : > { %v2335_v42 = vadd.f32 %v5280_v0, %v5014_v6  ;;  %v2338_v52 = vadd.f32 %v5280_v0, %v5023_v15  ;;  %v2343_v35 = vadd.f32 %v5280_v0, %v5010_v63  ;;  %v3242_v45 = vrot.slane %v5202_v3, 4 }
 0x200   : > { %v3146_v57 = vadd.f32 %v3145_v53, %v2871_v54  ;;  %v2888_v50 = vmax.f32 %v2330_v18, 0.0  ;;  %v3205_v53 = vrot.slane %v5115_v12, 4  ;;  %v2346_v6 = vadd.f32 %v5280_v0, %v5019_v9  ;;  %v3932_v18 = vld [vmem:[%s5402_s5] ss:$0 sm:$0xff] }
 0x201   : > { %v2889_v55 = vmax.f32 %v2335_v42, 0.0  ;;  %v2890_v5 = vmax.f32 %v2338_v52, 0.0  ;;  %v2891_v15 = vmax.f32 %v2343_v35, 0.0  ;;  %v3243_v2 = vadd.f32 %v3242_v45, %v5202_v3 }
 0x202   : > { %v3147_v61 = vadd.f32 %v3146_v57, %v2872_v56  ;;  %v3279_v57 = vrot.slane %v5269_v28, 4  ;;  %v2892_v63 = vmax.f32 %v2346_v6, 0.0 }
 0x204   : > { %v3148_v49 = vadd.f32 %v3147_v61, %v2873_v59  ;;  %v3206_v61 = vadd.f32 %v3205_v53, %v5115_v12 }
 0x206   : > { %v3149_v4 = vadd.f32 %v3148_v49, %v2874_v62  ;;  %v3280_v49 = vadd.f32 %v3279_v57, %v5269_v28  ;;  %v3207_v31 = vrot.slane %v3206_v61, 2 }
 0x208   : > { %v3150_v11 = vadd.f32 %v3149_v4, %v2875_v7  ;;  %v3244_v4 = vrot.slane %v3243_v2, 2  ;;  %v3281_v39 = vrot.slane %v3280_v49, 2  ;;  %v3208_v24 = vadd.f32 %v3207_v31, %v3206_v61 }
 0x20a   : > { %v3151_v14 = vadd.f32 %v3150_v11, %v2876_v8  ;;  %v3282_v0 = vadd.f32 %v3281_v39, %v3280_v49  ;;  %v3209_v33 = vrot.slane %v3208_v24, 1 }
 0x20c   : > { %v3152_v20 = vadd.f32 %v3151_v14, %v2877_v13  ;;  %v3245_v13 = vadd.f32 %v3244_v4, %v3243_v2 }
 0x20e   : > { %v3153_v21 = vadd.f32 %v3152_v20, %v2878_v19  ;;  %v3246_v12 = vrot.slane %v3245_v13, 1  ;;  %v3283_v20 = vrot.slane %v3282_v0, 1 }
 0x210   : > { %v3154_v26 = vadd.f32 %v3153_v21, %v2879_v17  ;;  %v3210_v17 = vadd.f32 %v3209_v33, %v3208_v24  ;;  %v3247_v58 = vadd.f32 %v3246_v12, %v3245_v13  ;;  %v3284_v21 = vadd.f32 %v3283_v20, %v3282_v0 }
 0x212   : > { %v3155_v27 = vadd.f32 %v3154_v26, %v2880_v22  ;;  %v3291_v1 = vmul.f32 0.00390625, %v3210_v17  ;;  %v3292_v26 = vmul.f32 0.00390625, %v3247_v58 }
 0x214   : > { %v3156_v29 = vadd.f32 %v3155_v27, %v2881_v25  ;;  %v3293_v25 = vmul.f32 0.00390625, %v3284_v21 }
 0x216   : > { %v3157_v34 = vadd.f32 %v3156_v29, %v2882_v30  ;;  %v4568_v29 = vld [vmem:[%s5403_s6] sm:$0xff]  }
 0x218   : > { %v3158_v38 = vadd.f32 %v3157_v34, %v2883_v32  ;;  %v4571_v34 = vld [vmem:[%s5403_s6 + $0x18] sm:$0xff]  }
 0x21a   : > { %v3159_v37 = vadd.f32 %v3158_v38, %v2884_v36  ;;  %v4572_v36 = vld [vmem:[%s5403_s6 + $0x20] sm:$0xff]   ;;  %v4574_v38 = vld [vmem:[%s5403_s6 + $0x30] sm:$0xff]  }
 0x21c   : > { %v3160_v44 = vadd.f32 %v3159_v37, %v2885_v48  ;;  %v3931_v48 = vld [vmem:[%s5401_s4] ss:$0 sm:$0xff] }
 0x21e   : > { %v3161_v47 = vadd.f32 %v3160_v44, %v2886_v41 }
 0x220   : > { %v3162_v54 = vadd.f32 %v3161_v47, %v2887_v46 }
 0x222   : > { %v3163_v56 = vadd.f32 %v3162_v54, %v2888_v50  ;;  %v3933_v50 = vld [vmem:[%s5404_s7] ss:$0 sm:$0xff] }
 0x224   : > { %v3164_v59 = vadd.f32 %v3163_v56, %v2889_v55 }
 0x226   : > { %v3165_v62 = vadd.f32 %v3164_v59, %v2890_v5 }
 0x228   : > { %v3166_v7 = vadd.f32 %v3165_v62, %v2891_v15 }
 0x22a   : > { %v3167_v8 = vadd.f32 %v3166_v7, %v2892_v63 }
 0x22c   : > { %v3168_v11 = vrot.slane %v3167_v8, 4 }
 0x22e   : > { %v3169_v9 = vadd.f32 %v3168_v11, %v3167_v8 }
 0x230   : > { %v3170_v14 = vrot.slane %v3169_v9, 2 }
 0x232   : > { %v3171_v19 = vadd.f32 %v3170_v14, %v3169_v9 }
 0x234   : > { %v3172_v3 = vrot.slane %v3171_v19, 1 }
 0x236   : > { %v3173_v28 = vadd.f32 %v3172_v3, %v3171_v19 }
 0x238   : > { %v3290_v22 = vmul.f32 0.00390625, %v3173_v28 }
 0x23a   : > { %v3310_v51 = vsel %vm3309_vm6, %v3290_v22, %v5287_v40  ;;  %v4570_v40 = vld [vmem:[%s5403_s6 + $0x10] sm:$0xff]  }
 0x23b   : > { %v3312_v27 = vsel %vm3311_vm7, %v3291_v1, %v3310_v51 }
 0x23c   : > { %v3314_v60 = vsel %vm3313_vm8, %v3292_v26, %v3312_v27 }
 0x23d   : > { %v3316_v30 = vsel %vm3315_vm9, %v3293_v25, %v3314_v60 }
 0x23e   : > { %v3325_v32 = vpack.c.bf16 %v3316_v30, %v3316_v30 }
 0x240   : > { %4372 = vmatmul.mubr.bf16.vlgmr.msra.gmra.mrb[116].mxu1 %v3325_v32 }
 0x241   : > { %4376 = vmatpush3.bf16.msra.mxu1 %v4568_v29  ;;  %4391 = vmatprep.mubr.msk.bf16.mxu1 %vm4603_vm3, %v4602_v43 }
 0x242   : > { %4377 = vmatprep.subr.bf16.mxu1 %v4602_v43 }
 0x245   : > { %4378 = vmatpush3.bf16.msra.mxu1 %v4569_v16 }
 0x246   : > { %4379 = vmatprep.subr.bf16.mxu1 %v4602_v43 }
 0x249   : > { %4380 = vmatpush3.bf16.msra.mxu1 %v4570_v40 }
 0x24a   : > { %4381 = vmatprep.subr.bf16.mxu1 %v4602_v43 }
 0x24d   : > { %4382 = vmatpush3.bf16.msra.mxu1 %v4571_v34 }
 0x24e   : > { %4383 = vmatprep.subr.bf16.mxu1 %v4602_v43 }
 0x251   : > { %4384 = vmatpush3.bf16.msra.mxu1 %v4572_v36 }
 0x252   : > { %4385 = vmatprep.subr.bf16.mxu1 %v4602_v43 }
 0x255   : > { %4386 = vmatpush3.bf16.msra.mxu1 %v4573_v23 }
 0x256   : > { %4387 = vmatprep.subr.bf16.mxu1 %v4602_v43 }
 0x259   : > { %4388 = vmatpush3.bf16.msra.mxu1 %v4574_v38 }
 0x25a   : > { %4389 = vmatprep.subr.bf16.mxu1 %v4602_v43 }
 0x25d   : > { %4390 = vmatpush3.bf16.msra.mxu1 %v4575_v10 }
 0x313   : > { %v3424_v37 = vpop.f32.mrb[116].mxu1 }
 0x314   : > { %v3437_v41 = vsub.f32 %v3424_v37, %v3931_v48  ;;  %v4373_v44 = vpop.f32.mrb[117].mxu1 }
 0x315   : > { %v3427_v43 = vpop.f32.mrb[118].mxu1 }
 0x316   : > { %v3445_v46 = vmul.f32 %v3932_v18, %v3437_v41  ;;  %v4374_v42 = vpop.f32.mrb[119].mxu1 }
 0x318   : > { %3446 = vst [vmem:[%s362_s18] sm:$0xff] %v3445_v46  ;;  %v3447_v47 = vpack.c.bf16 %v3445_v46, %v3445_v46 }
 0x31a   : > { %4392 = vmatmul.mubr.bf16.vlgmr.msra.gmra.mrb[120].mxu1 %v3447_v47 }
 0x3ed   : > { %v3553_v52 = vpop.f32.mrb[120].mxu1 }
 0x3ee   : > { %v3554_v54 = vadd.f32 %v3933_v50, %v3553_v52  ;;  %v4393_v53 = vpop.f32.mrb[121].mxu1 }
 0x3ef   : > { %v3556_v35 = vpop.f32.mrb[122].mxu1 }
 0x3f0   : > { %3559 = vst [vmem:[%s358_s22] sm:$0xff] %v3554_v54  ;;  %v4394_v55 = vpop.f32.mrb[123].mxu1 }
 0x3f1 PF: > { %s20_s11 = sadd.s32 1, %s4600_s11   ;;  %s5407_s30 = smov %s4596_s10 }
 0x3f2   : > { %p17_p6 = scmp.ge.s32.totalorder %s20_s11, 4   ;;  %s5408_s10 = smov %s5410_s12 }
 0x3f4   :  { %19 = sbr.rel (!%p17_p6) target bundleno = 2 (0x2), region = 99 }

</bundles_post_ra>
